<compile_context>
chip_gen: v6e
topology: v6e:2x2x1
jax: 0.10.0
libtpu: 0.0.40
codegen_flags: <defaults>
</compile_context>

<pallas_src>
import functools

import jax
import jax.numpy as jnp
from jax import lax
from jax.experimental import pallas as pl
from jax.experimental.pallas import tpu as pltpu


def _round_up(n, m):
    return ((n + m - 1) // m) * m


# -----------------------------------------------------------------------------
# Kernel 1: fused multi-layer LSTM, one batch block per grid step.
#   x_ref    : (S, Bb, Gin)  time-major input block for this batch slice
#   w_ih_ref : (L, Gin, 4E)  input->gate weights (zero rows above E in wide mode)
#   w_hh_ref : (L, Gin, 4E)  hidden->gate weights (zero rows above E in wide mode)
#   b_ref    : (L, 1, 4E)    bias_ih + bias_hh
#   out_ref  : (S, Bb, Gw)   last layer's hidden states (Gw == Gin)
#   act_sc   : (S, Bb, Gw)   VMEM ping buffer with the current layer activations
#   xp_sc    : (S, Bb, 4E)   VMEM buffer holding the hoisted input projection
# -----------------------------------------------------------------------------
def fused_lstm_kernel(x_ref, w_ih_ref, w_hh_ref, b_ref, out_ref, act_sc, xp_sc,
                      *, seq_len, hidden, wide, unroll, matmul_dtype):
    S = seq_len
    E = hidden
    L = w_ih_ref.shape[0]
    Bb = x_ref.shape[1]
    G4 = 4 * E
    Gw = out_ref.shape[2]

    for l in range(L):                        # static unroll over layers
        w_ih_l = w_ih_ref[l]                  # (Gin, 4E) - loaded once per layer
        w_hh_l = w_hh_ref[l]                  # (Gin, 4E) - resident over the time loop
        b_l = b_ref[l]                        # (1, 4E)

        # Hoisted input projection: one MXU matmul with M = S*Bb rows, done
        # once per layer (removes half the matmuls from the serial chain).
        src = x_ref if l == 0 else act_sc
        xs = src[...].reshape(S * Bb, src.shape[2])
        xp = jnp.dot(xs.astype(matmul_dtype), w_ih_l.astype(matmul_dtype),
                     preferred_element_type=jnp.float32) + b_l
        xp_sc[...] = xp.reshape(S, Bb, G4)

        # The layer input is fully consumed into xp_sc before the time loop,
        # so the layer output can overwrite the same activation buffer.  The
        # last layer writes straight to the kernel output.
        dst = out_ref if l == L - 1 else act_sc

        def step(t, carry):
            h, c = carry                                           # (Bb, Gw)
            gates = xp_sc[t] + jnp.dot(
                h, w_hh_l, preferred_element_type=jnp.float32)     # (Bb, 4E)
            if wide:
                # Full-tile EUP nonlinearities + XLU lane rotations; lanes
                # [0, E) of c/h carry the real state, the rest are bounded
                # garbage that only ever multiplies zero weight rows.
                sg = jax.nn.sigmoid(gates)     # [sig(i)|sig(f)|  --  |sig(o)]
                tg = jnp.tanh(gates)           # [  --  |  --  |tanhg |  --  ]
                f_al = pltpu.roll(sg, shift=3 * E, axis=1)  # lanes[0,E)=sig(f)
                g_al = pltpu.roll(tg, shift=2 * E, axis=1)  # lanes[0,E)=tanh(g)
                o_al = pltpu.roll(sg, shift=1 * E, axis=1)  # lanes[0,E)=sig(o)
                c_new = f_al * c + sg * g_al
                h_new = o_al * jnp.tanh(c_new)
            else:
                # E >= 128: gate slices are vreg-aligned, slice directly.
                i_g = jax.nn.sigmoid(gates[:, 0 * E:1 * E])
                f_g = jax.nn.sigmoid(gates[:, 1 * E:2 * E])
                g_g = jnp.tanh(gates[:, 2 * E:3 * E])
                o_g = jax.nn.sigmoid(gates[:, 3 * E:4 * E])
                c_new = f_g * c + i_g * g_g
                h_new = o_g * jnp.tanh(c_new)
            dst[t] = h_new                     # aligned (Bb, Gw) slab store
            return (h_new, c_new)

        h0 = jnp.zeros((Bb, Gw), jnp.float32)
        c0 = jnp.zeros((Bb, Gw), jnp.float32)
        lax.fori_loop(0, S, step, (h0, c0), unroll=unroll)


def fused_lstm(x_tm, w_ih, w_hh, b, *, hidden, batch_block,
               matmul_dtype=jnp.float32):
    S, Bp, Gin = x_tm.shape
    L = w_ih.shape[0]
    assert Bp % batch_block == 0
    wide = Gin != hidden

    # Partial unroll for long sequences; full unroll only when S is small.
    if S <= 8:
        unroll = True
    else:
        unroll = next((u for u in (8, 4, 2) if S % u == 0), 1)

    kernel = functools.partial(
        fused_lstm_kernel, seq_len=S, hidden=hidden, wide=wide, unroll=unroll,
        matmul_dtype=matmul_dtype)

    return pl.pallas_call(
        kernel,
        out_shape=jax.ShapeDtypeStruct((S, Bp, Gin), jnp.float32),
        grid=(Bp // batch_block,),
        in_specs=[
            pl.BlockSpec((S, batch_block, Gin), lambda i: (0, i, 0)),
            pl.BlockSpec((L, Gin, 4 * hidden), lambda i: (0, 0, 0)),
            pl.BlockSpec((L, Gin, 4 * hidden), lambda i: (0, 0, 0)),
            pl.BlockSpec((L, 1, 4 * hidden), lambda i: (0, 0, 0)),
        ],
        out_specs=pl.BlockSpec((S, batch_block, Gin), lambda i: (0, i, 0)),
        scratch_shapes=[
            pltpu.VMEM((S, batch_block, Gin), jnp.float32),        # ping buffer
            pltpu.VMEM((S, batch_block, 4 * hidden), jnp.float32), # hoisted proj
        ],
        compiler_params=pltpu.CompilerParams(
            dimension_semantics=("parallel",),
            vmem_limit_bytes=64 * 1024 * 1024),
    )(x_tm, w_ih, w_hh, b)


# -----------------------------------------------------------------------------
# Kernel 2: head = (BatchNorm folded into weights) + Linear.  Tiled matmul.
# -----------------------------------------------------------------------------
def head_kernel(h_ref, w_ref, b_ref, out_ref):
    out_ref[...] = (
        jnp.dot(h_ref[...], w_ref[...], preferred_element_type=jnp.float32)
        + b_ref[...]
    ).astype(out_ref.dtype)


def bn_fc(h_flat, w_eff, b_eff, *, tm=256, tv=512, matmul_dtype=jnp.float32):
    N, E = h_flat.shape
    V = w_eff.shape[1]
    # Tiles must divide the (padded) problem; pad instead of degenerating to a
    # single whole-array block (keeps pipelining + bounded VMEM on v7x).
    tm = min(tm, _round_up(N, 8))
    tv = min(tv, _round_up(V, 128))
    Np = _round_up(N, tm)
    Vp = _round_up(V, tv)
    h_p = jnp.pad(h_flat, ((0, Np - N), (0, 0))) if Np != N else h_flat
    w_p = jnp.pad(w_eff, ((0, 0), (0, Vp - V))) if Vp != V else w_eff
    b_p = jnp.pad(b_eff, ((0, 0), (0, Vp - V))) if Vp != V else b_eff

    # TODO(synk): emit bf16 logits / fuse the consumer (softmax, sampling) to
    # cut the dominant HBM-write traffic; kept f32 to match module semantics.
    out = pl.pallas_call(
        head_kernel,
        out_shape=jax.ShapeDtypeStruct((Np, Vp), jnp.float32),
        grid=(Np // tm, Vp // tv),
        in_specs=[
            pl.BlockSpec((tm, E), lambda i, j: (i, 0)),
            pl.BlockSpec((E, tv), lambda i, j: (0, j)),
            pl.BlockSpec((1, tv), lambda i, j: (0, j)),
        ],
        out_specs=pl.BlockSpec((tm, tv), lambda i, j: (i, j)),
        compiler_params=pltpu.CompilerParams(
            dimension_semantics=("parallel", "parallel"),
            vmem_limit_bytes=64 * 1024 * 1024),
    )(h_p.astype(matmul_dtype), w_p.astype(matmul_dtype), b_p)
    if Np != N or Vp != V:
        out = out[:N, :V]
    return out


# -----------------------------------------------------------------------------
# Parameter construction (deterministic, matches the PyTorch module's shapes).
# -----------------------------------------------------------------------------
def init_params(key, vocab_size, embed_dim, num_layers, pad_token_idx):
    keys = jax.random.split(key, 3 + 4 * num_layers)
    k_it = iter(keys)
    E = embed_dim
    s = 1.0 / (E ** 0.5)

    # nn.Embedding(vocab_size, embed_dim, padding_idx=pad_token_idx)
    emb = 0.02 * jax.random.normal(next(k_it), (vocab_size, E), jnp.float32)
    emb = emb.at[pad_token_idx].set(0.0)

    # nn.LSTM(embed_dim, embed_dim, num_layers, batch_first=True), stacked.
    # Gate column order: [i | f | g | o] (PyTorch convention).
    w_ih_l, w_hh_l, b_l = [], [], []
    for _ in range(num_layers):
        w_ih = s * jax.random.normal(next(k_it), (E, 4 * E), jnp.float32)
        w_hh = s * jax.random.normal(next(k_it), (E, 4 * E), jnp.float32)
        b_ih = s * jax.random.normal(next(k_it), (1, 4 * E), jnp.float32)
        b_hh = s * jax.random.normal(next(k_it), (1, 4 * E), jnp.float32)
        w_ih_l.append(w_ih)
        w_hh_l.append(w_hh)
        b_l.append(b_ih + b_hh)
    w_ih = jnp.stack(w_ih_l)        # (L, E, 4E)
    w_hh = jnp.stack(w_hh_l)        # (L, E, 4E)
    b_lstm = jnp.stack(b_l)         # (L, 1, 4E)

    # nn.BatchNorm1d(embed_dim) eval: gamma=1, beta=0, mean=0, var=1
    eps = 1e-5
    gamma = jnp.ones((1, E), jnp.float32)
    beta = jnp.zeros((1, E), jnp.float32)
    run_mean = jnp.zeros((1, E), jnp.float32)
    run_var = jnp.ones((1, E), jnp.float32)
    bn_scale = gamma / jnp.sqrt(run_var + eps)
    bn_shift = beta - run_mean * bn_scale

    # nn.Linear(embed_dim, vocab_size)
    w_fc = s * jax.random.normal(next(k_it), (E, vocab_size), jnp.float32)
    b_fc = s * jax.random.normal(next(k_it), (1, vocab_size), jnp.float32)

    return dict(emb=emb, w_ih=w_ih, w_hh=w_hh, b_lstm=b_lstm,
                bn_scale=bn_scale, bn_shift=bn_shift, w_fc=w_fc, b_fc=b_fc)


def pack_params(params):
    """Build kernel-ready arrays: gate-width zero padding + BN folding."""
    E = params["w_fc"].shape[0]
    wide = E < 128
    gin = 4 * E if wide else E

    emb = params["emb"]
    w_ih = params["w_ih"]
    w_hh = params["w_hh"]
    if wide:
        # Zero-pad the contraction dim to 4E so the recurrent state can be a
        # lane-aligned (Bb, 4E) tile; pad rows are zero -> no contribution.
        emb = jnp.pad(emb, ((0, 0), (0, gin - E)))
        w_ih = jnp.pad(w_ih, ((0, 0), (0, gin - E), (0, 0)))
        w_hh = jnp.pad(w_hh, ((0, 0), (0, gin - E), (0, 0)))

    # Fold eval-mode BatchNorm into the FC projection (host-side, once):
    #   (h*scale + shift) @ W + b  ==  h @ (scale^T * W) + (shift @ W + b)
    w_fc_eff = params["bn_scale"].reshape(E, 1) * params["w_fc"]
    b_fc_eff = params["b_fc"] + params["bn_shift"] @ params["w_fc"]

    return dict(emb=emb, w_ih=w_ih, w_hh=w_hh, b_lstm=params["b_lstm"],
                w_fc_eff=w_fc_eff, b_fc_eff=b_fc_eff)


# -----------------------------------------------------------------------------
# Forward pass (mirrors DataGenerator.forward, eval mode).
# -----------------------------------------------------------------------------
@jax.jit
def data_generator_forward(packed, x):
    B, S = x.shape
    E = packed["w_fc_eff"].shape[0]

    # Embedding lookup on the transposed (tiny int32) ids -> time-major slab.
    ids_tm = jnp.transpose(x)                                  # (S, B)
    x_tm = jnp.take(packed["emb"], ids_tm, axis=0)             # (S, B, Gin)

    # Pad the batch to a sublane-aligned block size; batch blocks form the
    # "parallel" grid axis of the fused LSTM kernel.
    bb = min(32, _round_up(B, 8))
    bp = _round_up(B, bb)
    if bp != B:
        x_tm = jnp.pad(x_tm, ((0, 0), (0, bp - B), (0, 0)))

    # Fused multi-layer LSTM: one Pallas kernel, gridded over batch blocks.
    h_tm = fused_lstm(x_tm, packed["w_ih"], packed["w_hh"], packed["b_lstm"],
                      hidden=E, batch_block=bb)                # (S, Bp, Gin)

    # Drop batch padding + wide lanes, reorder to PyTorch's (B*S, E) order.
    # TODO(synk): this (S,B)->(B,S) reorder is a small XLA relayout between
    # the two pallas_calls; it could be folded into the head's index_map.
    h = h_tm[:, :B, :E]
    h_bs = jnp.transpose(h, (1, 0, 2)).reshape(B * S, E)

    # BN (folded) + dropout (eval identity) + fc : tiled Pallas head kernel.
    logits = bn_fc(h_bs, packed["w_fc_eff"], packed["b_fc_eff"])   # (B*S, V)
    return logits.reshape(B, S, -1)


# -----------------------------------------------------------------------------
# Pure-JAX reference (unfused, unpadded, unfolded) for correctness checking.
# -----------------------------------------------------------------------------
def reference_forward(params, x):
    emb = jnp.take(params["emb"], x, axis=0)                   # (B, S, E)
    B, S, E = emb.shape
    h_seq = jnp.transpose(emb, (1, 0, 2))                      # (S, B, E)
    L = params["w_ih"].shape[0]
    for l in range(L):
        w_ih = params["w_ih"][l]
        w_hh = params["w_hh"][l]
        b = params["b_lstm"][l]

        def step(carry, x_t):
            h, c = carry
            g = x_t @ w_ih + h @ w_hh + b
            i = jax.nn.sigmoid(g[:, 0 * E:1 * E])
            f = jax.nn.sigmoid(g[:, 1 * E:2 * E])
            gg = jnp.tanh(g[:, 2 * E:3 * E])
            o = jax.nn.sigmoid(g[:, 3 * E:4 * E])
            c = f * c + i * gg
            h = o * jnp.tanh(c)
            return (h, c), h

        init = (jnp.zeros((B, E), jnp.float32), jnp.zeros((B, E), jnp.float32))
        _, h_seq = lax.scan(step, init, h_seq)
    lstm_out = jnp.transpose(h_seq, (1, 0, 2)).reshape(B * S, E)
    lstm_out = lstm_out * params["bn_scale"] + params["bn_shift"]
    logits = lstm_out @ params["w_fc"] + params["b_fc"]
    return logits.reshape(B, S, -1)


if __name__ == "__main__":
    vocab_size = 128
    embed_dim = 32
    num_layers = 2
    pad_token_idx = 0
    B, S = 2, 8

    root = jax.random.PRNGKey(0)
    k_params, k_data = jax.random.split(root)

    params = init_params(k_params, vocab_size, embed_dim, num_layers,
                         pad_token_idx)
    packed = pack_params(params)
    x = jax.random.randint(k_data, (B, S), 0, vocab_size, dtype=jnp.int32)

    logits = data_generator_forward(packed, x)
    logits = jax.block_until_ready(logits)

    assert logits.shape == (B, S, vocab_size)
    assert logits.dtype == jnp.float32
    assert bool(jnp.all(jnp.isfinite(logits)))

    ref = reference_forward(params, x)
    max_err = float(jnp.max(jnp.abs(logits - ref)))
    assert bool(jnp.allclose(logits, ref, atol=1e-3, rtol=1e-3)), max_err

    print("KERNEL_OK")
</pallas_src>

<mosaic_0001>
module attributes {stable_mosaic.version = 11 : i64} {
  func.func @head_kernel(%arg0: i32, %arg1: i32, %arg2: memref<16x32xf32, #tpu.memory_space<vmem>>, %arg3: memref<32x128xf32, #tpu.memory_space<vmem>>, %arg4: memref<1x128xf32, #tpu.memory_space<vmem>>, %arg5: memref<16x128xf32, #tpu.memory_space<vmem>>) attributes {dimension_semantics = [#tpu.dimension_semantics<parallel>, #tpu.dimension_semantics<parallel>], iteration_bounds = array<i64: 1, 1>, scalar_prefetch = 0 : i64, scratch_operands = 0 : i64, tpu.core_type = #tpu.core_type<tc>, window_params = [{transform_indices = @transform_0, window_bounds = array<i64: 16, 32>}, {transform_indices = @transform_1, window_bounds = array<i64: 32, 128>}, {transform_indices = @transform_2, window_bounds = array<i64: 1, 128>}, {transform_indices = @transform_3, window_bounds = array<i64: 16, 128>}]} {
    %c0 = arith.constant 0 : index
    %c0_0 = arith.constant 0 : index
    %0 = vector.load %arg2[%c0, %c0_0] : memref<16x32xf32, #tpu.memory_space<vmem>>, vector<16x32xf32>
    %c0_1 = arith.constant 0 : index
    %c0_2 = arith.constant 0 : index
    %1 = vector.load %arg3[%c0_1, %c0_2] : memref<32x128xf32, #tpu.memory_space<vmem>>, vector<32x128xf32>
    %cst = arith.constant dense<0.000000e+00> : vector<16x128xf32>
    %2 = tpu.matmul %0, %1, %cst {dimension_numbers = #tpu.dot_dimension_numbers<[1], [0], [0], [1], [0, 0, 1, 1], [], []>} : vector<16x32xf32>, vector<32x128xf32>, vector<16x128xf32> -> vector<16x128xf32>
    %c0_3 = arith.constant 0 : index
    %c0_4 = arith.constant 0 : index
    %3 = vector.load %arg4[%c0_3, %c0_4] : memref<1x128xf32, #tpu.memory_space<vmem>>, vector<1x128xf32>
    %4 = vector.broadcast %3 : vector<1x128xf32> to vector<16x128xf32>
    %5 = arith.addf %2, %4 : vector<16x128xf32>
    %c0_5 = arith.constant 0 : index
    %c0_6 = arith.constant 0 : index
    %6 = vector.load %arg5[%c0_5, %c0_6] : memref<16x128xf32, #tpu.memory_space<vmem>>, vector<16x128xf32>
    tpu.vector_store %arg5[%c0_5, %c0_6], %5 {strides = array<i32>} : memref<16x128xf32, #tpu.memory_space<vmem>>, vector<16x128xf32>,
    return
  }
  func.func @transform_0(%arg0: i32, %arg1: i32) -> (i32, i32) {
    %c0_i32 = arith.constant 0 : i32
    %c0_i32_0 = arith.constant 0 : i32
    return %arg0, %c0_i32 : i32, i32
  }
  func.func @transform_1(%arg0: i32, %arg1: i32) -> (i32, i32) {
    %c0_i32 = arith.constant 0 : i32
    %c0_i32_0 = arith.constant 0 : i32
    return %c0_i32, %arg1 : i32, i32
  }
  func.func @transform_2(%arg0: i32, %arg1: i32) -> (i32, i32) {
    %c0_i32 = arith.constant 0 : i32
    %c0_i32_0 = arith.constant 0 : i32
    return %c0_i32, %arg1 : i32, i32
  }
  func.func @transform_3(%arg0: i32, %arg1: i32) -> (i32, i32) {
    %c0_i32 = arith.constant 0 : i32
    return %arg0, %arg1 : i32, i32
  }
}

module attributes {stable_mosaic.version = 11 : i64} {
  func.func @fused_lstm_kernel(%arg0: i32, %arg1: memref<8x8x128xf32, #tpu.memory_space<vmem>>, %arg2: memref<2x128x128xf32, #tpu.memory_space<vmem>>, %arg3: memref<2x128x128xf32, #tpu.memory_space<vmem>>, %arg4: memref<2x1x128xf32, #tpu.memory_space<vmem>>, %arg5: memref<8x8x128xf32, #tpu.memory_space<vmem>>, %arg6: memref<8x8x128xf32, #tpu.memory_space<vmem>>, %arg7: memref<8x8x128xf32, #tpu.memory_space<vmem>>) attributes {dimension_semantics = [#tpu.dimension_semantics<parallel>], iteration_bounds = array<i64: 1>, scalar_prefetch = 0 : i64, scratch_operands = 2 : i64, tpu.core_type = #tpu.core_type<tc>, window_params = [{transform_indices = @transform_0, window_bounds = array<i64: 8, 8, 128>}, {pipeline_mode = #tpu.pipeline_mode<synchronous>, transform_indices = @transform_1, window_bounds = array<i64: 2, 128, 128>}, {pipeline_mode = #tpu.pipeline_mode<synchronous>, transform_indices = @transform_2, window_bounds = array<i64: 2, 128, 128>}, {pipeline_mode = #tpu.pipeline_mode<synchronous>, transform_indices = @transform_3, window_bounds = array<i64: 2, 1, 128>}, {transform_indices = @transform_4, window_bounds = array<i64: 8, 8, 128>}]} {
    %c0 = arith.constant 0 : index
    %c0_0 = arith.constant 0 : index
    %c0_1 = arith.constant 0 : index
    %0 = vector.load %arg2[%c0, %c0_0, %c0_1] : memref<2x128x128xf32, #tpu.memory_space<vmem>>, vector<1x128x128xf32>
    %1 = vector.shape_cast %0 : vector<1x128x128xf32> to vector<128x128xf32>
    %c0_2 = arith.constant 0 : index
    %c0_3 = arith.constant 0 : index
    %c0_4 = arith.constant 0 : index
    %2 = vector.load %arg3[%c0_2, %c0_3, %c0_4] : memref<2x128x128xf32, #tpu.memory_space<vmem>>, vector<1x128x128xf32>
    %3 = vector.shape_cast %2 : vector<1x128x128xf32> to vector<128x128xf32>
    %c0_5 = arith.constant 0 : index
    %c0_6 = arith.constant 0 : index
    %c0_7 = arith.constant 0 : index
    %4 = vector.load %arg4[%c0_5, %c0_6, %c0_7] : memref<2x1x128xf32, #tpu.memory_space<vmem>>, vector<1x1x128xf32>
    %5 = vector.shape_cast %4 : vector<1x1x128xf32> to vector<1x128xf32>
    %c0_8 = arith.constant 0 : index
    %c0_9 = arith.constant 0 : index
    %c0_10 = arith.constant 0 : index
    %6 = vector.load %arg1[%c0_8, %c0_9, %c0_10] : memref<8x8x128xf32, #tpu.memory_space<vmem>>, vector<8x8x128xf32>
    %7 = vector.shape_cast %6 : vector<8x8x128xf32> to vector<64x128xf32>
    %cst = arith.constant dense<0.000000e+00> : vector<64x128xf32>
    %8 = tpu.matmul %7, %1, %cst {dimension_numbers = #tpu.dot_dimension_numbers<[1], [0], [0], [1], [0, 0, 1, 1], [], []>} : vector<64x128xf32>, vector<128x128xf32>, vector<64x128xf32> -> vector<64x128xf32>
    %9 = vector.broadcast %5 : vector<1x128xf32> to vector<64x128xf32>
    %10 = arith.addf %8, %9 : vector<64x128xf32>
    %11 = vector.shape_cast %10 : vector<64x128xf32> to vector<8x8x128xf32>
    %c0_11 = arith.constant 0 : index
    %c0_12 = arith.constant 0 : index
    %c0_13 = arith.constant 0 : index
    %12 = vector.load %arg7[%c0_11, %c0_12, %c0_13] : memref<8x8x128xf32, #tpu.memory_space<vmem>>, vector<8x8x128xf32>
    tpu.vector_store %arg7[%c0_11, %c0_12, %c0_13], %11 {strides = array<i32>} : memref<8x8x128xf32, #tpu.memory_space<vmem>>, vector<8x8x128xf32>,
    %cst_14 = arith.constant 0.000000e+00 : f32
    %13 = vector.broadcast %cst_14 : f32 to vector<8x128xf32>
    %cst_15 = arith.constant 0.000000e+00 : f32
    %14 = vector.broadcast %cst_15 : f32 to vector<8x128xf32>
    %c0_i32 = arith.constant 0 : i32
    %15 = arith.index_cast %c0_i32 : i32 to index
    %c0_16 = arith.constant 0 : index
    %c0_17 = arith.constant 0 : index
    %16 = vector.load %arg7[%15, %c0_16, %c0_17] : memref<8x8x128xf32, #tpu.memory_space<vmem>>, vector<1x8x128xf32>
    %17 = vector.shape_cast %16 : vector<1x8x128xf32> to vector<8x128xf32>
    %cst_18 = arith.constant dense<0.000000e+00> : vector<8x128xf32>
    %18 = tpu.matmul %13, %3, %cst_18 {dimension_numbers = #tpu.dot_dimension_numbers<[1], [0], [0], [1], [0, 0, 1, 1], [], []>} : vector<8x128xf32>, vector<128x128xf32>, vector<8x128xf32> -> vector<8x128xf32>
    %19 = arith.addf %17, %18 : vector<8x128xf32>
    %20 = arith.negf %19 : vector<8x128xf32>
    %21 = math.exp %20 : vector<8x128xf32>
    %cst_19 = arith.constant 1.000000e+00 : f32
    %22 = vector.broadcast %cst_19 : f32 to vector<8x128xf32>
    %23 = arith.addf %22, %21 : vector<8x128xf32>
    %24 = arith.divf %22, %23 : vector<8x128xf32>
    %25 = math.tanh %19 : vector<8x128xf32>
    %c96_i32 = arith.constant 96 : i32
    %26 = tpu.dynamic_rotate %24 by %c96_i32 dim 1 : vector<8x128xf32>, i32 -> vector<8x128xf32>
    %c64_i32 = arith.constant 64 : i32
    %27 = tpu.dynamic_rotate %25 by %c64_i32 dim 1 : vector<8x128xf32>, i32 -> vector<8x128xf32>
    %c32_i32 = arith.constant 32 : i32
    %28 = tpu.dynamic_rotate %24 by %c32_i32 dim 1 : vector<8x128xf32>, i32 -> vector<8x128xf32>
    %29 = arith.mulf %26, %14 : vector<8x128xf32>
    %30 = arith.mulf %24, %27 : vector<8x128xf32>
    %31 = arith.addf %29, %30 : vector<8x128xf32>
    %32 = math.tanh %31 : vector<8x128xf32>
    %33 = arith.mulf %28, %32 : vector<8x128xf32>
    %34 = arith.index_cast %c0_i32 : i32 to index
    %c0_20 = arith.constant 0 : index
    %c0_21 = arith.constant 0 : index
    %35 = vector.load %arg6[%34, %c0_20, %c0_21] : memref<8x8x128xf32, #tpu.memory_space<vmem>>, vector<1x8x128xf32>
    %36 = vector.shape_cast %35 : vector<1x8x128xf32> to vector<8x128xf32>
    %37 = vector.shape_cast %33 : vector<8x128xf32> to vector<1x8x128xf32>
    tpu.vector_store %arg6[%34, %c0_20, %c0_21], %37 {strides = array<i32>} : memref<8x8x128xf32, #tpu.memory_space<vmem>>, vector<1x8x128xf32>,
    %c1_i32 = arith.constant 1 : i32
    %38 = arith.index_cast %c1_i32 : i32 to index
    %c0_22 = arith.constant 0 : index
    %c0_23 = arith.constant 0 : index
    %39 = vector.load %arg7[%38, %c0_22, %c0_23] : memref<8x8x128xf32, #tpu.memory_space<vmem>>, vector<1x8x128xf32>
    %40 = vector.shape_cast %39 : vector<1x8x128xf32> to vector<8x128xf32>
    %cst_24 = arith.constant dense<0.000000e+00> : vector<8x128xf32>
    %41 = tpu.matmul %33, %3, %cst_24 {dimension_numbers = #tpu.dot_dimension_numbers<[1], [0], [0], [1], [0, 0, 1, 1], [], []>} : vector<8x128xf32>, vector<128x128xf32>, vector<8x128xf32> -> vector<8x128xf32>
    %42 = arith.addf %40, %41 : vector<8x128xf32>
    %43 = arith.negf %42 : vector<8x128xf32>
    %44 = math.exp %43 : vector<8x128xf32>
    %cst_25 = arith.constant 1.000000e+00 : f32
    %45 = vector.broadcast %cst_25 : f32 to vector<8x128xf32>
    %46 = arith.addf %45, %44 : vector<8x128xf32>
    %47 = arith.divf %45, %46 : vector<8x128xf32>
    %48 = math.tanh %42 : vector<8x128xf32>
    %c96_i32_26 = arith.constant 96 : i32
    %49 = tpu.dynamic_rotate %47 by %c96_i32_26 dim 1 : vector<8x128xf32>, i32 -> vector<8x128xf32>
    %c64_i32_27 = arith.constant 64 : i32
    %50 = tpu.dynamic_rotate %48 by %c64_i32_27 dim 1 : vector<8x128xf32>, i32 -> vector<8x128xf32>
    %c32_i32_28 = arith.constant 32 : i32
    %51 = tpu.dynamic_rotate %47 by %c32_i32_28 dim 1 : vector<8x128xf32>, i32 -> vector<8x128xf32>
    %52 = arith.mulf %49, %31 : vector<8x128xf32>
    %53 = arith.mulf %47, %50 : vector<8x128xf32>
    %54 = arith.addf %52, %53 : vector<8x128xf32>
    %55 = math.tanh %54 : vector<8x128xf32>
    %56 = arith.mulf %51, %55 : vector<8x128xf32>
    %57 = arith.index_cast %c1_i32 : i32 to index
    %c0_29 = arith.constant 0 : index
    %c0_30 = arith.constant 0 : index
    %58 = vector.load %arg6[%57, %c0_29, %c0_30] : memref<8x8x128xf32, #tpu.memory_space<vmem>>, vector<1x8x128xf32>
    %59 = vector.shape_cast %58 : vector<1x8x128xf32> to vector<8x128xf32>
    %60 = vector.shape_cast %56 : vector<8x128xf32> to vector<1x8x128xf32>
    tpu.vector_store %arg6[%57, %c0_29, %c0_30], %60 {strides = array<i32>} : memref<8x8x128xf32, #tpu.memory_space<vmem>>, vector<1x8x128xf32>,
    %c2_i32 = arith.constant 2 : i32
    %61 = arith.index_cast %c2_i32 : i32 to index
    %c0_31 = arith.constant 0 : index
    %c0_32 = arith.constant 0 : index
    %62 = vector.load %arg7[%61, %c0_31, %c0_32] : memref<8x8x128xf32, #tpu.memory_space<vmem>>, vector<1x8x128xf32>
    %63 = vector.shape_cast %62 : vector<1x8x128xf32> to vector<8x128xf32>
    %cst_33 = arith.constant dense<0.000000e+00> : vector<8x128xf32>
    %64 = tpu.matmul %56, %3, %cst_33 {dimension_numbers = #tpu.dot_dimension_numbers<[1], [0], [0], [1], [0, 0, 1, 1], [], []>} : vector<8x128xf32>, vector<128x128xf32>, vector<8x128xf32> -> vector<8x128xf32>
    %65 = arith.addf %63, %64 : vector<8x128xf32>
    %66 = arith.negf %65 : vector<8x128xf32>
    %67 = math.exp %66 : vector<8x128xf32>
    %cst_34 = arith.constant 1.000000e+00 : f32
    %68 = vector.broadcast %cst_34 : f32 to vector<8x128xf32>
    %69 = arith.addf %68, %67 : vector<8x128xf32>
    %70 = arith.divf %68, %69 : vector<8x128xf32>
    %71 = math.tanh %65 : vector<8x128xf32>
    %c96_i32_35 = arith.constant 96 : i32
    %72 = tpu.dynamic_rotate %70 by %c96_i32_35 dim 1 : vector<8x128xf32>, i32 -> vector<8x128xf32>
    %c64_i32_36 = arith.constant 64 : i32
    %73 = tpu.dynamic_rotate %71 by %c64_i32_36 dim 1 : vector<8x128xf32>, i32 -> vector<8x128xf32>
    %c32_i32_37 = arith.constant 32 : i32
    %74 = tpu.dynamic_rotate %70 by %c32_i32_37 dim 1 : vector<8x128xf32>, i32 -> vector<8x128xf32>
    %75 = arith.mulf %72, %54 : vector<8x128xf32>
    %76 = arith.mulf %70, %73 : vector<8x128xf32>
    %77 = arith.addf %75, %76 : vector<8x128xf32>
    %78 = math.tanh %77 : vector<8x128xf32>
    %79 = arith.mulf %74, %78 : vector<8x128xf32>
    %80 = arith.index_cast %c2_i32 : i32 to index
    %c0_38 = arith.constant 0 : index
    %c0_39 = arith.constant 0 : index
    %81 = vector.load %arg6[%80, %c0_38, %c0_39] : memref<8x8x128xf32, #tpu.memory_space<vmem>>, vector<1x8x128xf32>
    %82 = vector.shape_cast %81 : vector<1x8x128xf32> to vector<8x128xf32>
    %83 = vector.shape_cast %79 : vector<8x128xf32> to vector<1x8x128xf32>
    tpu.vector_store %arg6[%80, %c0_38, %c0_39], %83 {strides = array<i32>} : memref<8x8x128xf32, #tpu.memory_space<vmem>>, vector<1x8x128xf32>,
    %c3_i32 = arith.constant 3 : i32
    %84 = arith.index_cast %c3_i32 : i32 to index
    %c0_40 = arith.constant 0 : index
    %c0_41 = arith.constant 0 : index
    %85 = vector.load %arg7[%84, %c0_40, %c0_41] : memref<8x8x128xf32, #tpu.memory_space<vmem>>, vector<1x8x128xf32>
    %86 = vector.shape_cast %85 : vector<1x8x128xf32> to vector<8x128xf32>
    %cst_42 = arith.constant dense<0.000000e+00> : vector<8x128xf32>
    %87 = tpu.matmul %79, %3, %cst_42 {dimension_numbers = #tpu.dot_dimension_numbers<[1], [0], [0], [1], [0, 0, 1, 1], [], []>} : vector<8x128xf32>, vector<128x128xf32>, vector<8x128xf32> -> vector<8x128xf32>
    %88 = arith.addf %86, %87 : vector<8x128xf32>
    %89 = arith.negf %88 : vector<8x128xf32>
    %90 = math.exp %89 : vector<8x128xf32>
    %cst_43 = arith.constant 1.000000e+00 : f32
    %91 = vector.broadcast %cst_43 : f32 to vector<8x128xf32>
    %92 = arith.addf %91, %90 : vector<8x128xf32>
    %93 = arith.divf %91, %92 : vector<8x128xf32>
    %94 = math.tanh %88 : vector<8x128xf32>
    %c96_i32_44 = arith.constant 96 : i32
    %95 = tpu.dynamic_rotate %93 by %c96_i32_44 dim 1 : vector<8x128xf32>, i32 -> vector<8x128xf32>
    %c64_i32_45 = arith.constant 64 : i32
    %96 = tpu.dynamic_rotate %94 by %c64_i32_45 dim 1 : vector<8x128xf32>, i32 -> vector<8x128xf32>
    %c32_i32_46 = arith.constant 32 : i32
    %97 = tpu.dynamic_rotate %93 by %c32_i32_46 dim 1 : vector<8x128xf32>, i32 -> vector<8x128xf32>
    %98 = arith.mulf %95, %77 : vector<8x128xf32>
    %99 = arith.mulf %93, %96 : vector<8x128xf32>
    %100 = arith.addf %98, %99 : vector<8x128xf32>
    %101 = math.tanh %100 : vector<8x128xf32>
    %102 = arith.mulf %97, %101 : vector<8x128xf32>
    %103 = arith.index_cast %c3_i32 : i32 to index
    %c0_47 = arith.constant 0 : index
    %c0_48 = arith.constant 0 : index
    %104 = vector.load %arg6[%103, %c0_47, %c0_48] : memref<8x8x128xf32, #tpu.memory_space<vmem>>, vector<1x8x128xf32>
    %105 = vector.shape_cast %104 : vector<1x8x128xf32> to vector<8x128xf32>
    %106 = vector.shape_cast %102 : vector<8x128xf32> to vector<1x8x128xf32>
    tpu.vector_store %arg6[%103, %c0_47, %c0_48], %106 {strides = array<i32>} : memref<8x8x128xf32, #tpu.memory_space<vmem>>, vector<1x8x128xf32>,
    %c4_i32 = arith.constant 4 : i32
    %107 = arith.index_cast %c4_i32 : i32 to index
    %c0_49 = arith.constant 0 : index
    %c0_50 = arith.constant 0 : index
    %108 = vector.load %arg7[%107, %c0_49, %c0_50] : memref<8x8x128xf32, #tpu.memory_space<vmem>>, vector<1x8x128xf32>
    %109 = vector.shape_cast %108 : vector<1x8x128xf32> to vector<8x128xf32>
    %cst_51 = arith.constant dense<0.000000e+00> : vector<8x128xf32>
    %110 = tpu.matmul %102, %3, %cst_51 {dimension_numbers = #tpu.dot_dimension_numbers<[1], [0], [0], [1], [0, 0, 1, 1], [], []>} : vector<8x128xf32>, vector<128x128xf32>, vector<8x128xf32> -> vector<8x128xf32>
    %111 = arith.addf %109, %110 : vector<8x128xf32>
    %112 = arith.negf %111 : vector<8x128xf32>
    %113 = math.exp %112 : vector<8x128xf32>
    %cst_52 = arith.constant 1.000000e+00 : f32
    %114 = vector.broadcast %cst_52 : f32 to vector<8x128xf32>
    %115 = arith.addf %114, %113 : vector<8x128xf32>
    %116 = arith.divf %114, %115 : vector<8x128xf32>
    %117 = math.tanh %111 : vector<8x128xf32>
    %c96_i32_53 = arith.constant 96 : i32
    %118 = tpu.dynamic_rotate %116 by %c96_i32_53 dim 1 : vector<8x128xf32>, i32 -> vector<8x128xf32>
    %c64_i32_54 = arith.constant 64 : i32
    %119 = tpu.dynamic_rotate %117 by %c64_i32_54 dim 1 : vector<8x128xf32>, i32 -> vector<8x128xf32>
    %c32_i32_55 = arith.constant 32 : i32
    %120 = tpu.dynamic_rotate %116 by %c32_i32_55 dim 1 : vector<8x128xf32>, i32 -> vector<8x128xf32>
    %121 = arith.mulf %118, %100 : vector<8x128xf32>
    %122 = arith.mulf %116, %119 : vector<8x128xf32>
    %123 = arith.addf %121, %122 : vector<8x128xf32>
    %124 = math.tanh %123 : vector<8x128xf32>
    %125 = arith.mulf %120, %124 : vector<8x128xf32>
    %126 = arith.index_cast %c4_i32 : i32 to index
    %c0_56 = arith.constant 0 : index
    %c0_57 = arith.constant 0 : index
    %127 = vector.load %arg6[%126, %c0_56, %c0_57] : memref<8x8x128xf32, #tpu.memory_space<vmem>>, vector<1x8x128xf32>
    %128 = vector.shape_cast %127 : vector<1x8x128xf32> to vector<8x128xf32>
    %129 = vector.shape_cast %125 : vector<8x128xf32> to vector<1x8x128xf32>
    tpu.vector_store %arg6[%126, %c0_56, %c0_57], %129 {strides = array<i32>} : memref<8x8x128xf32, #tpu.memory_space<vmem>>, vector<1x8x128xf32>,
    %c5_i32 = arith.constant 5 : i32
    %130 = arith.index_cast %c5_i32 : i32 to index
    %c0_58 = arith.constant 0 : index
    %c0_59 = arith.constant 0 : index
    %131 = vector.load %arg7[%130, %c0_58, %c0_59] : memref<8x8x128xf32, #tpu.memory_space<vmem>>, vector<1x8x128xf32>
    %132 = vector.shape_cast %131 : vector<1x8x128xf32> to vector<8x128xf32>
    %cst_60 = arith.constant dense<0.000000e+00> : vector<8x128xf32>
    %133 = tpu.matmul %125, %3, %cst_60 {dimension_numbers = #tpu.dot_dimension_numbers<[1], [0], [0], [1], [0, 0, 1, 1], [], []>} : vector<8x128xf32>, vector<128x128xf32>, vector<8x128xf32> -> vector<8x128xf32>
    %134 = arith.addf %132, %133 : vector<8x128xf32>
    %135 = arith.negf %134 : vector<8x128xf32>
    %136 = math.exp %135 : vector<8x128xf32>
    %cst_61 = arith.constant 1.000000e+00 : f32
    %137 = vector.broadcast %cst_61 : f32 to vector<8x128xf32>
    %138 = arith.addf %137, %136 : vector<8x128xf32>
    %139 = arith.divf %137, %138 : vector<8x128xf32>
    %140 = math.tanh %134 : vector<8x128xf32>
    %c96_i32_62 = arith.constant 96 : i32
    %141 = tpu.dynamic_rotate %139 by %c96_i32_62 dim 1 : vector<8x128xf32>, i32 -> vector<8x128xf32>
    %c64_i32_63 = arith.constant 64 : i32
    %142 = tpu.dynamic_rotate %140 by %c64_i32_63 dim 1 : vector<8x128xf32>, i32 -> vector<8x128xf32>
    %c32_i32_64 = arith.constant 32 : i32
    %143 = tpu.dynamic_rotate %139 by %c32_i32_64 dim 1 : vector<8x128xf32>, i32 -> vector<8x128xf32>
    %144 = arith.mulf %141, %123 : vector<8x128xf32>
    %145 = arith.mulf %139, %142 : vector<8x128xf32>
    %146 = arith.addf %144, %145 : vector<8x128xf32>
    %147 = math.tanh %146 : vector<8x128xf32>
    %148 = arith.mulf %143, %147 : vector<8x128xf32>
    %149 = arith.index_cast %c5_i32 : i32 to index
    %c0_65 = arith.constant 0 : index
    %c0_66 = arith.constant 0 : index
    %150 = vector.load %arg6[%149, %c0_65, %c0_66] : memref<8x8x128xf32, #tpu.memory_space<vmem>>, vector<1x8x128xf32>
    %151 = vector.shape_cast %150 : vector<1x8x128xf32> to vector<8x128xf32>
    %152 = vector.shape_cast %148 : vector<8x128xf32> to vector<1x8x128xf32>
    tpu.vector_store %arg6[%149, %c0_65, %c0_66], %152 {strides = array<i32>} : memref<8x8x128xf32, #tpu.memory_space<vmem>>, vector<1x8x128xf32>,
    %c6_i32 = arith.constant 6 : i32
    %153 = arith.index_cast %c6_i32 : i32 to index
    %c0_67 = arith.constant 0 : index
    %c0_68 = arith.constant 0 : index
    %154 = vector.load %arg7[%153, %c0_67, %c0_68] : memref<8x8x128xf32, #tpu.memory_space<vmem>>, vector<1x8x128xf32>
    %155 = vector.shape_cast %154 : vector<1x8x128xf32> to vector<8x128xf32>
    %cst_69 = arith.constant dense<0.000000e+00> : vector<8x128xf32>
    %156 = tpu.matmul %148, %3, %cst_69 {dimension_numbers = #tpu.dot_dimension_numbers<[1], [0], [0], [1], [0, 0, 1, 1], [], []>} : vector<8x128xf32>, vector<128x128xf32>, vector<8x128xf32> -> vector<8x128xf32>
    %157 = arith.addf %155, %156 : vector<8x128xf32>
    %158 = arith.negf %157 : vector<8x128xf32>
    %159 = math.exp %158 : vector<8x128xf32>
    %cst_70 = arith.constant 1.000000e+00 : f32
    %160 = vector.broadcast %cst_70 : f32 to vector<8x128xf32>
    %161 = arith.addf %160, %159 : vector<8x128xf32>
    %162 = arith.divf %160, %161 : vector<8x128xf32>
    %163 = math.tanh %157 : vector<8x128xf32>
    %c96_i32_71 = arith.constant 96 : i32
    %164 = tpu.dynamic_rotate %162 by %c96_i32_71 dim 1 : vector<8x128xf32>, i32 -> vector<8x128xf32>
    %c64_i32_72 = arith.constant 64 : i32
    %165 = tpu.dynamic_rotate %163 by %c64_i32_72 dim 1 : vector<8x128xf32>, i32 -> vector<8x128xf32>
    %c32_i32_73 = arith.constant 32 : i32
    %166 = tpu.dynamic_rotate %162 by %c32_i32_73 dim 1 : vector<8x128xf32>, i32 -> vector<8x128xf32>
    %167 = arith.mulf %164, %146 : vector<8x128xf32>
    %168 = arith.mulf %162, %165 : vector<8x128xf32>
    %169 = arith.addf %167, %168 : vector<8x128xf32>
    %170 = math.tanh %169 : vector<8x128xf32>
    %171 = arith.mulf %166, %170 : vector<8x128xf32>
    %172 = arith.index_cast %c6_i32 : i32 to index
    %c0_74 = arith.constant 0 : index
    %c0_75 = arith.constant 0 : index
    %173 = vector.load %arg6[%172, %c0_74, %c0_75] : memref<8x8x128xf32, #tpu.memory_space<vmem>>, vector<1x8x128xf32>
    %174 = vector.shape_cast %173 : vector<1x8x128xf32> to vector<8x128xf32>
    %175 = vector.shape_cast %171 : vector<8x128xf32> to vector<1x8x128xf32>
    tpu.vector_store %arg6[%172, %c0_74, %c0_75], %175 {strides = array<i32>} : memref<8x8x128xf32, #tpu.memory_space<vmem>>, vector<1x8x128xf32>,
    %c7_i32 = arith.constant 7 : i32
    %176 = arith.index_cast %c7_i32 : i32 to index
    %c0_76 = arith.constant 0 : index
    %c0_77 = arith.constant 0 : index
    %177 = vector.load %arg7[%176, %c0_76, %c0_77] : memref<8x8x128xf32, #tpu.memory_space<vmem>>, vector<1x8x128xf32>
    %178 = vector.shape_cast %177 : vector<1x8x128xf32> to vector<8x128xf32>
    %cst_78 = arith.constant dense<0.000000e+00> : vector<8x128xf32>
    %179 = tpu.matmul %171, %3, %cst_78 {dimension_numbers = #tpu.dot_dimension_numbers<[1], [0], [0], [1], [0, 0, 1, 1], [], []>} : vector<8x128xf32>, vector<128x128xf32>, vector<8x128xf32> -> vector<8x128xf32>
    %180 = arith.addf %178, %179 : vector<8x128xf32>
    %181 = arith.negf %180 : vector<8x128xf32>
    %182 = math.exp %181 : vector<8x128xf32>
    %cst_79 = arith.constant 1.000000e+00 : f32
    %183 = vector.broadcast %cst_79 : f32 to vector<8x128xf32>
    %184 = arith.addf %183, %182 : vector<8x128xf32>
    %185 = arith.divf %183, %184 : vector<8x128xf32>
    %186 = math.tanh %180 : vector<8x128xf32>
    %c96_i32_80 = arith.constant 96 : i32
    %187 = tpu.dynamic_rotate %185 by %c96_i32_80 dim 1 : vector<8x128xf32>, i32 -> vector<8x128xf32>
    %c64_i32_81 = arith.constant 64 : i32
    %188 = tpu.dynamic_rotate %186 by %c64_i32_81 dim 1 : vector<8x128xf32>, i32 -> vector<8x128xf32>
    %c32_i32_82 = arith.constant 32 : i32
    %189 = tpu.dynamic_rotate %185 by %c32_i32_82 dim 1 : vector<8x128xf32>, i32 -> vector<8x128xf32>
    %190 = arith.mulf %187, %169 : vector<8x128xf32>
    %191 = arith.mulf %185, %188 : vector<8x128xf32>
    %192 = arith.addf %190, %191 : vector<8x128xf32>
    %193 = math.tanh %192 : vector<8x128xf32>
    %194 = arith.mulf %189, %193 : vector<8x128xf32>
    %195 = arith.index_cast %c7_i32 : i32 to index
    %c0_83 = arith.constant 0 : index
    %c0_84 = arith.constant 0 : index
    %196 = vector.load %arg6[%195, %c0_83, %c0_84] : memref<8x8x128xf32, #tpu.memory_space<vmem>>, vector<1x8x128xf32>
    %197 = vector.shape_cast %196 : vector<1x8x128xf32> to vector<8x128xf32>
    %198 = vector.shape_cast %194 : vector<8x128xf32> to vector<1x8x128xf32>
    tpu.vector_store %arg6[%195, %c0_83, %c0_84], %198 {strides = array<i32>} : memref<8x8x128xf32, #tpu.memory_space<vmem>>, vector<1x8x128xf32>,
    %c8_i32 = arith.constant 8 : i32
    %c1 = arith.constant 1 : index
    %c0_85 = arith.constant 0 : index
    %c0_86 = arith.constant 0 : index
    %199 = vector.load %arg2[%c1, %c0_85, %c0_86] : memref<2x128x128xf32, #tpu.memory_space<vmem>>, vector<1x128x128xf32>
    %200 = vector.shape_cast %199 : vector<1x128x128xf32> to vector<128x128xf32>
    %c1_87 = arith.constant 1 : index
    %c0_88 = arith.constant 0 : index
    %c0_89 = arith.constant 0 : index
    %201 = vector.load %arg3[%c1_87, %c0_88, %c0_89] : memref<2x128x128xf32, #tpu.memory_space<vmem>>, vector<1x128x128xf32>
    %202 = vector.shape_cast %201 : vector<1x128x128xf32> to vector<128x128xf32>
    %c1_90 = arith.constant 1 : index
    %c0_91 = arith.constant 0 : index
    %c0_92 = arith.constant 0 : index
    %203 = vector.load %arg4[%c1_90, %c0_91, %c0_92] : memref<2x1x128xf32, #tpu.memory_space<vmem>>, vector<1x1x128xf32>
    %204 = vector.shape_cast %203 : vector<1x1x128xf32> to vector<1x128xf32>
    %c0_93 = arith.constant 0 : index
    %c0_94 = arith.constant 0 : index
    %c0_95 = arith.constant 0 : index
    %205 = vector.load %arg6[%c0_93, %c0_94, %c0_95] : memref<8x8x128xf32, #tpu.memory_space<vmem>>, vector<8x8x128xf32>
    %206 = vector.shape_cast %205 : vector<8x8x128xf32> to vector<64x128xf32>
    %cst_96 = arith.constant dense<0.000000e+00> : vector<64x128xf32>
    %207 = tpu.matmul %206, %200, %cst_96 {dimension_numbers = #tpu.dot_dimension_numbers<[1], [0], [0], [1], [0, 0, 1, 1], [], []>} : vector<64x128xf32>, vector<128x128xf32>, vector<64x128xf32> -> vector<64x128xf32>
    %208 = vector.broadcast %204 : vector<1x128xf32> to vector<64x128xf32>
    %209 = arith.addf %207, %208 : vector<64x128xf32>
    %210 = vector.shape_cast %209 : vector<64x128xf32> to vector<8x8x128xf32>
    %c0_97 = arith.constant 0 : index
    %c0_98 = arith.constant 0 : index
    %c0_99 = arith.constant 0 : index
    %211 = vector.load %arg7[%c0_97, %c0_98, %c0_99] : memref<8x8x128xf32, #tpu.memory_space<vmem>>, vector<8x8x128xf32>
    tpu.vector_store %arg7[%c0_97, %c0_98, %c0_99], %210 {strides = array<i32>} : memref<8x8x128xf32, #tpu.memory_space<vmem>>, vector<8x8x128xf32>,
    %cst_100 = arith.constant 0.000000e+00 : f32
    %212 = vector.broadcast %cst_100 : f32 to vector<8x128xf32>
    %cst_101 = arith.constant 0.000000e+00 : f32
    %213 = vector.broadcast %cst_101 : f32 to vector<8x128xf32>
    %c0_i32_102 = arith.constant 0 : i32
    %214 = arith.index_cast %c0_i32_102 : i32 to index
    %c0_103 = arith.constant 0 : index
    %c0_104 = arith.constant 0 : index
    %215 = vector.load %arg7[%214, %c0_103, %c0_104] : memref<8x8x128xf32, #tpu.memory_space<vmem>>, vector<1x8x128xf32>
    %216 = vector.shape_cast %215 : vector<1x8x128xf32> to vector<8x128xf32>
    %cst_105 = arith.constant dense<0.000000e+00> : vector<8x128xf32>
    %217 = tpu.matmul %212, %202, %cst_105 {dimension_numbers = #tpu.dot_dimension_numbers<[1], [0], [0], [1], [0, 0, 1, 1], [], []>} : vector<8x128xf32>, vector<128x128xf32>, vector<8x128xf32> -> vector<8x128xf32>
    %218 = arith.addf %216, %217 : vector<8x128xf32>
    %219 = arith.negf %218 : vector<8x128xf32>
    %220 = math.exp %219 : vector<8x128xf32>
    %cst_106 = arith.constant 1.000000e+00 : f32
    %221 = vector.broadcast %cst_106 : f32 to vector<8x128xf32>
    %222 = arith.addf %221, %220 : vector<8x128xf32>
    %223 = arith.divf %221, %222 : vector<8x128xf32>
    %224 = math.tanh %218 : vector<8x128xf32>
    %c96_i32_107 = arith.constant 96 : i32
    %225 = tpu.dynamic_rotate %223 by %c96_i32_107 dim 1 : vector<8x128xf32>, i32 -> vector<8x128xf32>
    %c64_i32_108 = arith.constant 64 : i32
    %226 = tpu.dynamic_rotate %224 by %c64_i32_108 dim 1 : vector<8x128xf32>, i32 -> vector<8x128xf32>
    %c32_i32_109 = arith.constant 32 : i32
    %227 = tpu.dynamic_rotate %223 by %c32_i32_109 dim 1 : vector<8x128xf32>, i32 -> vector<8x128xf32>
    %228 = arith.mulf %225, %213 : vector<8x128xf32>
    %229 = arith.mulf %223, %226 : vector<8x128xf32>
    %230 = arith.addf %228, %229 : vector<8x128xf32>
    %231 = math.tanh %230 : vector<8x128xf32>
    %232 = arith.mulf %227, %231 : vector<8x128xf32>
    %233 = arith.index_cast %c0_i32_102 : i32 to index
    %c0_110 = arith.constant 0 : index
    %c0_111 = arith.constant 0 : index
    %234 = vector.load %arg5[%233, %c0_110, %c0_111] : memref<8x8x128xf32, #tpu.memory_space<vmem>>, vector<1x8x128xf32>
    %235 = vector.shape_cast %234 : vector<1x8x128xf32> to vector<8x128xf32>
    %236 = vector.shape_cast %232 : vector<8x128xf32> to vector<1x8x128xf32>
    tpu.vector_store %arg5[%233, %c0_110, %c0_111], %236 {strides = array<i32>} : memref<8x8x128xf32, #tpu.memory_space<vmem>>, vector<1x8x128xf32>,
    %c1_i32_112 = arith.constant 1 : i32
    %237 = arith.index_cast %c1_i32_112 : i32 to index
    %c0_113 = arith.constant 0 : index
    %c0_114 = arith.constant 0 : index
    %238 = vector.load %arg7[%237, %c0_113, %c0_114] : memref<8x8x128xf32, #tpu.memory_space<vmem>>, vector<1x8x128xf32>
    %239 = vector.shape_cast %238 : vector<1x8x128xf32> to vector<8x128xf32>
    %cst_115 = arith.constant dense<0.000000e+00> : vector<8x128xf32>
    %240 = tpu.matmul %232, %202, %cst_115 {dimension_numbers = #tpu.dot_dimension_numbers<[1], [0], [0], [1], [0, 0, 1, 1], [], []>} : vector<8x128xf32>, vector<128x128xf32>, vector<8x128xf32> -> vector<8x128xf32>
    %241 = arith.addf %239, %240 : vector<8x128xf32>
    %242 = arith.negf %241 : vector<8x128xf32>
    %243 = math.exp %242 : vector<8x128xf32>
    %cst_116 = arith.constant 1.000000e+00 : f32
    %244 = vector.broadcast %cst_116 : f32 to vector<8x128xf32>
    %245 = arith.addf %244, %243 : vector<8x128xf32>
    %246 = arith.divf %244, %245 : vector<8x128xf32>
    %247 = math.tanh %241 : vector<8x128xf32>
    %c96_i32_117 = arith.constant 96 : i32
    %248 = tpu.dynamic_rotate %246 by %c96_i32_117 dim 1 : vector<8x128xf32>, i32 -> vector<8x128xf32>
    %c64_i32_118 = arith.constant 64 : i32
    %249 = tpu.dynamic_rotate %247 by %c64_i32_118 dim 1 : vector<8x128xf32>, i32 -> vector<8x128xf32>
    %c32_i32_119 = arith.constant 32 : i32
    %250 = tpu.dynamic_rotate %246 by %c32_i32_119 dim 1 : vector<8x128xf32>, i32 -> vector<8x128xf32>
    %251 = arith.mulf %248, %230 : vector<8x128xf32>
    %252 = arith.mulf %246, %249 : vector<8x128xf32>
    %253 = arith.addf %251, %252 : vector<8x128xf32>
    %254 = math.tanh %253 : vector<8x128xf32>
    %255 = arith.mulf %250, %254 : vector<8x128xf32>
    %256 = arith.index_cast %c1_i32_112 : i32 to index
    %c0_120 = arith.constant 0 : index
    %c0_121 = arith.constant 0 : index
    %257 = vector.load %arg5[%256, %c0_120, %c0_121] : memref<8x8x128xf32, #tpu.memory_space<vmem>>, vector<1x8x128xf32>
    %258 = vector.shape_cast %257 : vector<1x8x128xf32> to vector<8x128xf32>
    %259 = vector.shape_cast %255 : vector<8x128xf32> to vector<1x8x128xf32>
    tpu.vector_store %arg5[%256, %c0_120, %c0_121], %259 {strides = array<i32>} : memref<8x8x128xf32, #tpu.memory_space<vmem>>, vector<1x8x128xf32>,
    %c2_i32_122 = arith.constant 2 : i32
    %260 = arith.index_cast %c2_i32_122 : i32 to index
    %c0_123 = arith.constant 0 : index
    %c0_124 = arith.constant 0 : index
    %261 = vector.load %arg7[%260, %c0_123, %c0_124] : memref<8x8x128xf32, #tpu.memory_space<vmem>>, vector<1x8x128xf32>
    %262 = vector.shape_cast %261 : vector<1x8x128xf32> to vector<8x128xf32>
    %cst_125 = arith.constant dense<0.000000e+00> : vector<8x128xf32>
    %263 = tpu.matmul %255, %202, %cst_125 {dimension_numbers = #tpu.dot_dimension_numbers<[1], [0], [0], [1], [0, 0, 1, 1], [], []>} : vector<8x128xf32>, vector<128x128xf32>, vector<8x128xf32> -> vector<8x128xf32>
    %264 = arith.addf %262, %263 : vector<8x128xf32>
    %265 = arith.negf %264 : vector<8x128xf32>
    %266 = math.exp %265 : vector<8x128xf32>
    %cst_126 = arith.constant 1.000000e+00 : f32
    %267 = vector.broadcast %cst_126 : f32 to vector<8x128xf32>
    %268 = arith.addf %267, %266 : vector<8x128xf32>
    %269 = arith.divf %267, %268 : vector<8x128xf32>
    %270 = math.tanh %264 : vector<8x128xf32>
    %c96_i32_127 = arith.constant 96 : i32
    %271 = tpu.dynamic_rotate %269 by %c96_i32_127 dim 1 : vector<8x128xf32>, i32 -> vector<8x128xf32>
    %c64_i32_128 = arith.constant 64 : i32
    %272 = tpu.dynamic_rotate %270 by %c64_i32_128 dim 1 : vector<8x128xf32>, i32 -> vector<8x128xf32>
    %c32_i32_129 = arith.constant 32 : i32
    %273 = tpu.dynamic_rotate %269 by %c32_i32_129 dim 1 : vector<8x128xf32>, i32 -> vector<8x128xf32>
    %274 = arith.mulf %271, %253 : vector<8x128xf32>
    %275 = arith.mulf %269, %272 : vector<8x128xf32>
    %276 = arith.addf %274, %275 : vector<8x128xf32>
    %277 = math.tanh %276 : vector<8x128xf32>
    %278 = arith.mulf %273, %277 : vector<8x128xf32>
    %279 = arith.index_cast %c2_i32_122 : i32 to index
    %c0_130 = arith.constant 0 : index
    %c0_131 = arith.constant 0 : index
    %280 = vector.load %arg5[%279, %c0_130, %c0_131] : memref<8x8x128xf32, #tpu.memory_space<vmem>>, vector<1x8x128xf32>
    %281 = vector.shape_cast %280 : vector<1x8x128xf32> to vector<8x128xf32>
    %282 = vector.shape_cast %278 : vector<8x128xf32> to vector<1x8x128xf32>
    tpu.vector_store %arg5[%279, %c0_130, %c0_131], %282 {strides = array<i32>} : memref<8x8x128xf32, #tpu.memory_space<vmem>>, vector<1x8x128xf32>,
    %c3_i32_132 = arith.constant 3 : i32
    %283 = arith.index_cast %c3_i32_132 : i32 to index
    %c0_133 = arith.constant 0 : index
    %c0_134 = arith.constant 0 : index
    %284 = vector.load %arg7[%283, %c0_133, %c0_134] : memref<8x8x128xf32, #tpu.memory_space<vmem>>, vector<1x8x128xf32>
    %285 = vector.shape_cast %284 : vector<1x8x128xf32> to vector<8x128xf32>
    %cst_135 = arith.constant dense<0.000000e+00> : vector<8x128xf32>
    %286 = tpu.matmul %278, %202, %cst_135 {dimension_numbers = #tpu.dot_dimension_numbers<[1], [0], [0], [1], [0, 0, 1, 1], [], []>} : vector<8x128xf32>, vector<128x128xf32>, vector<8x128xf32> -> vector<8x128xf32>
    %287 = arith.addf %285, %286 : vector<8x128xf32>
    %288 = arith.negf %287 : vector<8x128xf32>
    %289 = math.exp %288 : vector<8x128xf32>
    %cst_136 = arith.constant 1.000000e+00 : f32
    %290 = vector.broadcast %cst_136 : f32 to vector<8x128xf32>
    %291 = arith.addf %290, %289 : vector<8x128xf32>
    %292 = arith.divf %290, %291 : vector<8x128xf32>
    %293 = math.tanh %287 : vector<8x128xf32>
    %c96_i32_137 = arith.constant 96 : i32
    %294 = tpu.dynamic_rotate %292 by %c96_i32_137 dim 1 : vector<8x128xf32>, i32 -> vector<8x128xf32>
    %c64_i32_138 = arith.constant 64 : i32
    %295 = tpu.dynamic_rotate %293 by %c64_i32_138 dim 1 : vector<8x128xf32>, i32 -> vector<8x128xf32>
    %c32_i32_139 = arith.constant 32 : i32
    %296 = tpu.dynamic_rotate %292 by %c32_i32_139 dim 1 : vector<8x128xf32>, i32 -> vector<8x128xf32>
    %297 = arith.mulf %294, %276 : vector<8x128xf32>
    %298 = arith.mulf %292, %295 : vector<8x128xf32>
    %299 = arith.addf %297, %298 : vector<8x128xf32>
    %300 = math.tanh %299 : vector<8x128xf32>
    %301 = arith.mulf %296, %300 : vector<8x128xf32>
    %302 = arith.index_cast %c3_i32_132 : i32 to index
    %c0_140 = arith.constant 0 : index
    %c0_141 = arith.constant 0 : index
    %303 = vector.load %arg5[%302, %c0_140, %c0_141] : memref<8x8x128xf32, #tpu.memory_space<vmem>>, vector<1x8x128xf32>
    %304 = vector.shape_cast %303 : vector<1x8x128xf32> to vector<8x128xf32>
    %305 = vector.shape_cast %301 : vector<8x128xf32> to vector<1x8x128xf32>
    tpu.vector_store %arg5[%302, %c0_140, %c0_141], %305 {strides = array<i32>} : memref<8x8x128xf32, #tpu.memory_space<vmem>>, vector<1x8x128xf32>,
    %c4_i32_142 = arith.constant 4 : i32
    %306 = arith.index_cast %c4_i32_142 : i32 to index
    %c0_143 = arith.constant 0 : index
    %c0_144 = arith.constant 0 : index
    %307 = vector.load %arg7[%306, %c0_143, %c0_144] : memref<8x8x128xf32, #tpu.memory_space<vmem>>, vector<1x8x128xf32>
    %308 = vector.shape_cast %307 : vector<1x8x128xf32> to vector<8x128xf32>
    %cst_145 = arith.constant dense<0.000000e+00> : vector<8x128xf32>
    %309 = tpu.matmul %301, %202, %cst_145 {dimension_numbers = #tpu.dot_dimension_numbers<[1], [0], [0], [1], [0, 0, 1, 1], [], []>} : vector<8x128xf32>, vector<128x128xf32>, vector<8x128xf32> -> vector<8x128xf32>
    %310 = arith.addf %308, %309 : vector<8x128xf32>
    %311 = arith.negf %310 : vector<8x128xf32>
    %312 = math.exp %311 : vector<8x128xf32>
    %cst_146 = arith.constant 1.000000e+00 : f32
    %313 = vector.broadcast %cst_146 : f32 to vector<8x128xf32>
    %314 = arith.addf %313, %312 : vector<8x128xf32>
    %315 = arith.divf %313, %314 : vector<8x128xf32>
    %316 = math.tanh %310 : vector<8x128xf32>
    %c96_i32_147 = arith.constant 96 : i32
    %317 = tpu.dynamic_rotate %315 by %c96_i32_147 dim 1 : vector<8x128xf32>, i32 -> vector<8x128xf32>
    %c64_i32_148 = arith.constant 64 : i32
    %318 = tpu.dynamic_rotate %316 by %c64_i32_148 dim 1 : vector<8x128xf32>, i32 -> vector<8x128xf32>
    %c32_i32_149 = arith.constant 32 : i32
    %319 = tpu.dynamic_rotate %315 by %c32_i32_149 dim 1 : vector<8x128xf32>, i32 -> vector<8x128xf32>
    %320 = arith.mulf %317, %299 : vector<8x128xf32>
    %321 = arith.mulf %315, %318 : vector<8x128xf32>
    %322 = arith.addf %320, %321 : vector<8x128xf32>
    %323 = math.tanh %322 : vector<8x128xf32>
    %324 = arith.mulf %319, %323 : vector<8x128xf32>
    %325 = arith.index_cast %c4_i32_142 : i32 to index
    %c0_150 = arith.constant 0 : index
    %c0_151 = arith.constant 0 : index
    %326 = vector.load %arg5[%325, %c0_150, %c0_151] : memref<8x8x128xf32, #tpu.memory_space<vmem>>, vector<1x8x128xf32>
    %327 = vector.shape_cast %326 : vector<1x8x128xf32> to vector<8x128xf32>
    %328 = vector.shape_cast %324 : vector<8x128xf32> to vector<1x8x128xf32>
    tpu.vector_store %arg5[%325, %c0_150, %c0_151], %328 {strides = array<i32>} : memref<8x8x128xf32, #tpu.memory_space<vmem>>, vector<1x8x128xf32>,
    %c5_i32_152 = arith.constant 5 : i32
    %329 = arith.index_cast %c5_i32_152 : i32 to index
    %c0_153 = arith.constant 0 : index
    %c0_154 = arith.constant 0 : index
    %330 = vector.load %arg7[%329, %c0_153, %c0_154] : memref<8x8x128xf32, #tpu.memory_space<vmem>>, vector<1x8x128xf32>
    %331 = vector.shape_cast %330 : vector<1x8x128xf32> to vector<8x128xf32>
    %cst_155 = arith.constant dense<0.000000e+00> : vector<8x128xf32>
    %332 = tpu.matmul %324, %202, %cst_155 {dimension_numbers = #tpu.dot_dimension_numbers<[1], [0], [0], [1], [0, 0, 1, 1], [], []>} : vector<8x128xf32>, vector<128x128xf32>, vector<8x128xf32> -> vector<8x128xf32>
    %333 = arith.addf %331, %332 : vector<8x128xf32>
    %334 = arith.negf %333 : vector<8x128xf32>
    %335 = math.exp %334 : vector<8x128xf32>
    %cst_156 = arith.constant 1.000000e+00 : f32
    %336 = vector.broadcast %cst_156 : f32 to vector<8x128xf32>
    %337 = arith.addf %336, %335 : vector<8x128xf32>
    %338 = arith.divf %336, %337 : vector<8x128xf32>
    %339 = math.tanh %333 : vector<8x128xf32>
    %c96_i32_157 = arith.constant 96 : i32
    %340 = tpu.dynamic_rotate %338 by %c96_i32_157 dim 1 : vector<8x128xf32>, i32 -> vector<8x128xf32>
    %c64_i32_158 = arith.constant 64 : i32
    %341 = tpu.dynamic_rotate %339 by %c64_i32_158 dim 1 : vector<8x128xf32>, i32 -> vector<8x128xf32>
    %c32_i32_159 = arith.constant 32 : i32
    %342 = tpu.dynamic_rotate %338 by %c32_i32_159 dim 1 : vector<8x128xf32>, i32 -> vector<8x128xf32>
    %343 = arith.mulf %340, %322 : vector<8x128xf32>
    %344 = arith.mulf %338, %341 : vector<8x128xf32>
    %345 = arith.addf %343, %344 : vector<8x128xf32>
    %346 = math.tanh %345 : vector<8x128xf32>
    %347 = arith.mulf %342, %346 : vector<8x128xf32>
    %348 = arith.index_cast %c5_i32_152 : i32 to index
    %c0_160 = arith.constant 0 : index
    %c0_161 = arith.constant 0 : index
    %349 = vector.load %arg5[%348, %c0_160, %c0_161] : memref<8x8x128xf32, #tpu.memory_space<vmem>>, vector<1x8x128xf32>
    %350 = vector.shape_cast %349 : vector<1x8x128xf32> to vector<8x128xf32>
    %351 = vector.shape_cast %347 : vector<8x128xf32> to vector<1x8x128xf32>
    tpu.vector_store %arg5[%348, %c0_160, %c0_161], %351 {strides = array<i32>} : memref<8x8x128xf32, #tpu.memory_space<vmem>>, vector<1x8x128xf32>,
    %c6_i32_162 = arith.constant 6 : i32
    %352 = arith.index_cast %c6_i32_162 : i32 to index
    %c0_163 = arith.constant 0 : index
    %c0_164 = arith.constant 0 : index
    %353 = vector.load %arg7[%352, %c0_163, %c0_164] : memref<8x8x128xf32, #tpu.memory_space<vmem>>, vector<1x8x128xf32>
    %354 = vector.shape_cast %353 : vector<1x8x128xf32> to vector<8x128xf32>
    %cst_165 = arith.constant dense<0.000000e+00> : vector<8x128xf32>
    %355 = tpu.matmul %347, %202, %cst_165 {dimension_numbers = #tpu.dot_dimension_numbers<[1], [0], [0], [1], [0, 0, 1, 1], [], []>} : vector<8x128xf32>, vector<128x128xf32>, vector<8x128xf32> -> vector<8x128xf32>
    %356 = arith.addf %354, %355 : vector<8x128xf32>
    %357 = arith.negf %356 : vector<8x128xf32>
    %358 = math.exp %357 : vector<8x128xf32>
    %cst_166 = arith.constant 1.000000e+00 : f32
    %359 = vector.broadcast %cst_166 : f32 to vector<8x128xf32>
    %360 = arith.addf %359, %358 : vector<8x128xf32>
    %361 = arith.divf %359, %360 : vector<8x128xf32>
    %362 = math.tanh %356 : vector<8x128xf32>
    %c96_i32_167 = arith.constant 96 : i32
    %363 = tpu.dynamic_rotate %361 by %c96_i32_167 dim 1 : vector<8x128xf32>, i32 -> vector<8x128xf32>
    %c64_i32_168 = arith.constant 64 : i32
    %364 = tpu.dynamic_rotate %362 by %c64_i32_168 dim 1 : vector<8x128xf32>, i32 -> vector<8x128xf32>
    %c32_i32_169 = arith.constant 32 : i32
    %365 = tpu.dynamic_rotate %361 by %c32_i32_169 dim 1 : vector<8x128xf32>, i32 -> vector<8x128xf32>
    %366 = arith.mulf %363, %345 : vector<8x128xf32>
    %367 = arith.mulf %361, %364 : vector<8x128xf32>
    %368 = arith.addf %366, %367 : vector<8x128xf32>
    %369 = math.tanh %368 : vector<8x128xf32>
    %370 = arith.mulf %365, %369 : vector<8x128xf32>
    %371 = arith.index_cast %c6_i32_162 : i32 to index
    %c0_170 = arith.constant 0 : index
    %c0_171 = arith.constant 0 : index
    %372 = vector.load %arg5[%371, %c0_170, %c0_171] : memref<8x8x128xf32, #tpu.memory_space<vmem>>, vector<1x8x128xf32>
    %373 = vector.shape_cast %372 : vector<1x8x128xf32> to vector<8x128xf32>
    %374 = vector.shape_cast %370 : vector<8x128xf32> to vector<1x8x128xf32>
    tpu.vector_store %arg5[%371, %c0_170, %c0_171], %374 {strides = array<i32>} : memref<8x8x128xf32, #tpu.memory_space<vmem>>, vector<1x8x128xf32>,
    %c7_i32_172 = arith.constant 7 : i32
    %375 = arith.index_cast %c7_i32_172 : i32 to index
    %c0_173 = arith.constant 0 : index
    %c0_174 = arith.constant 0 : index
    %376 = vector.load %arg7[%375, %c0_173, %c0_174] : memref<8x8x128xf32, #tpu.memory_space<vmem>>, vector<1x8x128xf32>
    %377 = vector.shape_cast %376 : vector<1x8x128xf32> to vector<8x128xf32>
    %cst_175 = arith.constant dense<0.000000e+00> : vector<8x128xf32>
    %378 = tpu.matmul %370, %202, %cst_175 {dimension_numbers = #tpu.dot_dimension_numbers<[1], [0], [0], [1], [0, 0, 1, 1], [], []>} : vector<8x128xf32>, vector<128x128xf32>, vector<8x128xf32> -> vector<8x128xf32>
    %379 = arith.addf %377, %378 : vector<8x128xf32>
    %380 = arith.negf %379 : vector<8x128xf32>
    %381 = math.exp %380 : vector<8x128xf32>
    %cst_176 = arith.constant 1.000000e+00 : f32
    %382 = vector.broadcast %cst_176 : f32 to vector<8x128xf32>
    %383 = arith.addf %382, %381 : vector<8x128xf32>
    %384 = arith.divf %382, %383 : vector<8x128xf32>
    %385 = math.tanh %379 : vector<8x128xf32>
    %c96_i32_177 = arith.constant 96 : i32
    %386 = tpu.dynamic_rotate %384 by %c96_i32_177 dim 1 : vector<8x128xf32>, i32 -> vector<8x128xf32>
    %c64_i32_178 = arith.constant 64 : i32
    %387 = tpu.dynamic_rotate %385 by %c64_i32_178 dim 1 : vector<8x128xf32>, i32 -> vector<8x128xf32>
    %c32_i32_179 = arith.constant 32 : i32
    %388 = tpu.dynamic_rotate %384 by %c32_i32_179 dim 1 : vector<8x128xf32>, i32 -> vector<8x128xf32>
    %389 = arith.mulf %386, %368 : vector<8x128xf32>
    %390 = arith.mulf %384, %387 : vector<8x128xf32>
    %391 = arith.addf %389, %390 : vector<8x128xf32>
    %392 = math.tanh %391 : vector<8x128xf32>
    %393 = arith.mulf %388, %392 : vector<8x128xf32>
    %394 = arith.index_cast %c7_i32_172 : i32 to index
    %c0_180 = arith.constant 0 : index
    %c0_181 = arith.constant 0 : index
    %395 = vector.load %arg5[%394, %c0_180, %c0_181] : memref<8x8x128xf32, #tpu.memory_space<vmem>>, vector<1x8x128xf32>
    %396 = vector.shape_cast %395 : vector<1x8x128xf32> to vector<8x128xf32>
    %397 = vector.shape_cast %393 : vector<8x128xf32> to vector<1x8x128xf32>
    tpu.vector_store %arg5[%394, %c0_180, %c0_181], %397 {strides = array<i32>} : memref<8x8x128xf32, #tpu.memory_space<vmem>>, vector<1x8x128xf32>,
    %c8_i32_182 = arith.constant 8 : i32
    return
  }
  func.func @transform_0(%arg0: i32) -> (i32, i32, i32) {
    %c0_i32 = arith.constant 0 : i32
    %c0_i32_0 = arith.constant 0 : i32
    %c0_i32_1 = arith.constant 0 : i32
    return %c0_i32, %arg0, %c0_i32_0 : i32, i32, i32
  }
  func.func @transform_1(%arg0: i32) -> (i32, i32, i32) {
    %c0_i32 = arith.constant 0 : i32
    %c0_i32_0 = arith.constant 0 : i32
    %c0_i32_1 = arith.constant 0 : i32
    %c0_i32_2 = arith.constant 0 : i32
    return %c0_i32, %c0_i32_0, %c0_i32_1 : i32, i32, i32
  }
  func.func @transform_2(%arg0: i32) -> (i32, i32, i32) {
    %c0_i32 = arith.constant 0 : i32
    %c0_i32_0 = arith.constant 0 : i32
    %c0_i32_1 = arith.constant 0 : i32
    %c0_i32_2 = arith.constant 0 : i32
    return %c0_i32, %c0_i32_0, %c0_i32_1 : i32, i32, i32
  }
  func.func @transform_3(%arg0: i32) -> (i32, i32, i32) {
    %c0_i32 = arith.constant 0 : i32
    %c0_i32_0 = arith.constant 0 : i32
    %c0_i32_1 = arith.constant 0 : i32
    %c0_i32_2 = arith.constant 0 : i32
    return %c0_i32, %c0_i32_0, %c0_i32_1 : i32, i32, i32
  }
  func.func @transform_4(%arg0: i32) -> (i32, i32, i32) {
    %c0_i32 = arith.constant 0 : i32
    %c0_i32_0 = arith.constant 0 : i32
    %c0_i32_1 = arith.constant 0 : i32
    return %c0_i32, %arg0, %c0_i32_0 : i32, i32, i32
  }
}

</mosaic_0001>

<bundles_post_ra>
// kernel: data_generator_forward.3
= control target key start
LH: loop header
LB: loop body
LE: loop exit
PB: predicated region body
PF: predicated region fallthrough
CT: control target
= control target key end

     0   :  { %vm28_vm0 = vcmask 261120   ;;  %s220_s0 = inlined_call_operand.vmem [shape: f32[16,32], index: 0, kind: input, shape index: {}]   ;;  %s221_s1 = inlined_call_operand.vmem [shape: f32[32,128], index: 1, kind: input, shape index: {}]   ;;  %s222_s2 = inlined_call_operand.vmem [shape: f32[1,128], index: 2, kind: input, shape index: {}]   ;;  %s223_s3 = inlined_call_operand.hbm [shape: f32[16,128], index: 3, kind: output, shape index: {}]  }
   0x1   :  { %v20_v0 = vld [vmem:[%s221_s1 + $0x18] sm:$0xff]  ;;  %v19_v1 = vld [vmem:[%s221_s1 + $0x10] sm:$0xff]  ;;  %v15_v2 = vld [vmem:[%s220_s0] sm:$0xff] }
   0x2   :  { %137 = vmatprep.subr.mxu0 %v20_v0  ;;  %v18_v3 = vld [vmem:[%s221_s1 + $0x8] sm:$0xff]  ;;  %145 = vmatprep.mubr.msk.f32.mxu0 %vm28_vm0, %v15_v2 }
   0x3   :  { %138 = vmatpush3.msra.mxu0 %v20_v0 }
   0x4   :  { %8 = vsyncpa [#allocation3], 0  ;;  %139 = vmatprep.subr.mxu0 %v19_v1  ;;  %v17_v4 = vld [vmem:[%s221_s1] sm:$0xff]  ;;  %v16_v5 = vld [vmem:[%s220_s0 + $0x8] sm:$0xff]  ;;  %s173_s26 = smov [#allocation2]  }
   0x5   :  { %140 = vmatpush3.msra.mxu0 %v19_v1  ;;  %v128_v6 = vld [vmem:[%s222_s2] ss:$0 sm:$0xff]  ;;  %s117_s27 = sshll.u32 %s173_s26, 4  ;;  %s118_s27 = int_to_ptr.vmem [resolvable:$true] %s117_s27 }
   0x6   :  { %141 = vmatprep.subr.mxu0 %v18_v3  ;;  %s151_s1 = scalar_lea.vmem %s118_s27, 256  ;;  %p156_p1 = scmp.lt.s32.totalorder %s118_s27, %s118_s27 }
   0x7   :  { %142 = vmatpush3.msra.mxu0 %v18_v3  ;;  %p152_p0 = scmp.ne.s32.totalorder %s118_s27, %s151_s1  ;;  %p157_p2 = scmp.lt.s32.totalorder %s151_s1, %s151_s1 }
   0x8   :  { %143 = vmatprep.subr.mxu0 %v17_v4 }
   0x9   :  { %144 = vmatpush3.msra.mxu0 %v17_v4  ;;  %p158_p3 = por %p157_p2, %p156_p1 }
   0xa   :  { %146 = vmatmul.mubr.msk.f32.vlgmr.msra.gmra.mxu0 %vm28_vm0, %v16_v5 }
   0xb   :  { %p159_p4 = pnand %p158_p3, %p152_p0 }
  0xca   :  { %v147_v7 = vpop.f32.mrf.mxu0 }
  0xcb   :  { %v107_v8 = vadd.f32 %v147_v7, %v128_v6 }
  0xcc   :  { %v101_v9 = vpop.f32.mrf.mxu0 }
  0xcd   :  { %111 = vst [vmem:[#allocation2 + $0x8] sm:$0xff] %v107_v8  ;;  %v102_v10 = vadd.f32 %v128_v6, %v101_v9 }
  0xcf   :  { %110 = vst [vmem:[#allocation2] sm:$0xff] %v102_v10 }
  0xd0   :  { %162 = shalt.err (!%p159_p4)
}
  0xd1   :  { %s174_s0 = smov 128   ;;  %s175_s28 = smov 8  }
  0xd2   :  { %123 = dma.vmem_to_hbm [thread:$0]  %s118_s27, 256, %s223_s3, [#allocation3], %s174_s0, %s174_s0, %s175_s28  }
  0xd3   :  { %171 = dma.done.wait [#allocation3], 256  }
  0xd4   :  { %172 = vsyncadd [#allocation3], 4294967040 }
  0xd5   :  { %127 = vsyncpa [#allocation3], 1 }

// kernel: data_generator_forward.2
= control target key start
LH: loop header
LB: loop body
LE: loop exit
PB: predicated region body
PF: predicated region fallthrough
CT: control target
= control target key end

     0   :  { %9 = vsyncpa [#allocation5], 0  ;;  %s3005_s15 = smov [#allocation4]   ;;  %s3949_s0 = inlined_call_operand.vmem [shape: f32[8,8,128], index: 0, kind: input, shape index: {}]   ;;  %s3950_s1 = inlined_call_operand.vmem [shape: f32[2,128,128], index: 1, kind: input, shape index: {}]   ;;  %s3951_s2 = inlined_call_operand.hbm [shape: f32[2,128,128], index: 2, kind: input, shape index: {}]   ;;  %s3952_s3 = inlined_call_operand.vmem [shape: f32[2,1,128], index: 3, kind: input, shape index: {}]   ;;  %s3953_s4 = inlined_call_operand.vmem [shape: f32[8,8,128], index: 4, kind: output, shape index: {}]  }
   0x1   :  { %s19_s16 = sshll.u32 %s3005_s15, 4  ;;  %s20_s16 = int_to_ptr.vmem [resolvable:$true] %s19_s16 }
   0x2   :  { %s2991_s17 = scalar_lea.vmem %s20_s16, 4096  ;;  %p2996_p1 = scmp.lt.s32.totalorder %s20_s16, %s20_s16 }
   0x3   :  { %p2992_p0 = scmp.ne.s32.totalorder %s20_s16, %s2991_s17  ;;  %p2997_p2 = scmp.lt.s32.totalorder %s2991_s17, %s2991_s17 }
   0x5   :  { %p2998_p3 = por %p2997_p2, %p2996_p1 }
   0x7   :  { %p2999_p4 = pnand %p2998_p3, %p2992_p0 }
   0x9   :  { %3002 = shalt.err (!%p2999_p4)
}
   0xa   :  { %s3006_s18 = smov 128   ;;  %s3007_s19 = smov 8  }
   0xb   :  { %25 = dma.hbm_to_vmem [thread:$0]  %s3951_s2, 4096, %s20_s16, [#allocation5], %s3006_s18, %s3006_s18, %s3007_s19  }
   0xc   :  { %3003 = dma.done.wait [#allocation5], 4096  }
   0xd   :  { %3004 = vsyncadd [#allocation5], 4294963200  ;;  %v3008_v0 = vmov 0.0   ;;  %vm3009_vm0 = vmmov 0   ;;  %v46_v1 = vld [vmem:[%s3950_s1 + $0x78] sm:$0xff]  ;;  %v45_v2 = vld [vmem:[%s3950_s1 + $0x70] sm:$0xff] }
   0xe   :  { %2242 = vmatprep.subr.mxu1 %v3008_v0  ;;  %2274 = vmatprep.mubr.msk.f32.mxu1 %vm3009_vm0, %v3008_v0  ;;  %v3050_v3 = vld [vmem:[#allocation4 + $0x78] sm:$0xff]  ;;  %v3053_v4 = vld [vmem:[#allocation4 + $0x70] sm:$0xff]  ;;  %v44_v5 = vld [vmem:[%s3950_s1 + $0x68] sm:$0xff]  ;;  %s3010_s16 = smov 32   ;;  %s3011_s17 = smov 96  }
   0xf   :  { %2198 = vmatprep.subr.mxu0 %v46_v1  ;;  %2243 = vmatpush3.msra.mxu1 %v3050_v3  ;;  %v3059_v6 = vld [vmem:[#allocation4 + $0x68] sm:$0xff]  ;;  %v43_v7 = vld [vmem:[%s3950_s1 + $0x60] sm:$0xff]  ;;  %v42_v9 = vld [vmem:[%s3950_s1 + $0x58] sm:$0xff]  ;;  %s3012_s20 = smov 64  }
  0x10   :  { %2199 = vmatpush3.msra.mxu0 %v46_v1  ;;  %2244 = vmatprep.subr.mxu1 %v3008_v0  ;;  %v3066_v8 = vld [vmem:[#allocation4 + $0x60] sm:$0xff]  ;;  %v3073_v10 = vld [vmem:[#allocation4 + $0x58] sm:$0xff]  ;;  %v41_v11 = vld [vmem:[%s3950_s1 + $0x50] sm:$0xff] }
  0x11   :  { %2200 = vmatprep.subr.mxu0 %v45_v2  ;;  %2245 = vmatpush3.msra.mxu1 %v3053_v4  ;;  %v3080_v12 = vld [vmem:[#allocation4 + $0x50] sm:$0xff]  ;;  %v40_v13 = vld [vmem:[%s3950_s1 + $0x48] sm:$0xff]  ;;  %v39_v15 = vld [vmem:[%s3950_s1 + $0x40] sm:$0xff] }
  0x12   :  { %2201 = vmatpush3.msra.mxu0 %v45_v2  ;;  %2246 = vmatprep.subr.mxu1 %v3008_v0  ;;  %v3087_v14 = vld [vmem:[#allocation4 + $0x48] sm:$0xff]  ;;  %v3094_v16 = vld [vmem:[#allocation4 + $0x40] sm:$0xff]  ;;  %v38_v17 = vld [vmem:[%s3950_s1 + $0x38] sm:$0xff] }
  0x13   :  { %2202 = vmatprep.subr.mxu0 %v44_v5  ;;  %2247 = vmatpush3.msra.mxu1 %v3059_v6  ;;  %v3101_v18 = vld [vmem:[#allocation4 + $0x38] sm:$0xff]  ;;  %v37_v19 = vld [vmem:[%s3950_s1 + $0x30] sm:$0xff]  ;;  %v36_v21 = vld [vmem:[%s3950_s1 + $0x28] sm:$0xff] }
  0x14   :  { %2203 = vmatpush3.msra.mxu0 %v44_v5  ;;  %2248 = vmatprep.subr.mxu1 %v3008_v0  ;;  %v3108_v20 = vld [vmem:[#allocation4 + $0x30] sm:$0xff]  ;;  %v3115_v22 = vld [vmem:[#allocation4 + $0x28] sm:$0xff]  ;;  %v35_v23 = vld [vmem:[%s3950_s1 + $0x20] sm:$0xff] }
  0x15   :  { %2204 = vmatprep.subr.mxu0 %v43_v7  ;;  %2249 = vmatpush3.msra.mxu1 %v3066_v8  ;;  %v3122_v24 = vld [vmem:[#allocation4 + $0x20] sm:$0xff]  ;;  %v34_v25 = vld [vmem:[%s3950_s1 + $0x18] sm:$0xff]  ;;  %v33_v27 = vld [vmem:[%s3950_s1 + $0x10] sm:$0xff] }
  0x16   :  { %2205 = vmatpush3.msra.mxu0 %v43_v7  ;;  %2250 = vmatprep.subr.mxu1 %v3008_v0  ;;  %v3129_v26 = vld [vmem:[#allocation4 + $0x18] sm:$0xff]  ;;  %v3136_v28 = vld [vmem:[#allocation4 + $0x10] sm:$0xff]  ;;  %v32_v29 = vld [vmem:[%s3950_s1 + $0x8] sm:$0xff] }
  0x17   :  { %2206 = vmatprep.subr.mxu0 %v42_v9  ;;  %2251 = vmatpush3.msra.mxu1 %v3073_v10  ;;  %v64_v30 = vld [vmem:[%s3949_s0] sm:$0xff]  ;;  %v3147_v31 = vld [vmem:[#allocation4 + $0x8] sm:$0xff]  ;;  %v66_v45 = vld [vmem:[%s3949_s0 + $0x10] sm:$0xff] }
  0x18   :  { %2207 = vmatpush3.msra.mxu0 %v42_v9  ;;  %2252 = vmatprep.subr.mxu1 %v3008_v0  ;;  %v31_v32 = vld [vmem:[%s3950_s1] sm:$0xff]  ;;  %v65_v34 = vld [vmem:[%s3949_s0 + $0x8] sm:$0xff]  ;;  %v67_v46 = vld [vmem:[%s3949_s0 + $0x18] sm:$0xff] }
  0x19   :  { %2208 = vmatprep.subr.mxu0 %v41_v11  ;;  %2253 = vmatpush3.msra.mxu1 %v3080_v12  ;;  %v3153_v33 = vld [vmem:[#allocation4] sm:$0xff]  ;;  %v69_v48 = vld [vmem:[%s3949_s0 + $0x28] sm:$0xff]  ;;  %v70_v50 = vld [vmem:[%s3949_s0 + $0x30] sm:$0xff] }
  0x1a   :  { %2209 = vmatpush3.msra.mxu0 %v41_v11  ;;  %2254 = vmatprep.subr.mxu1 %v3008_v0  ;;  %v3235_v37 = vld [vmem:[%s3952_s3] ss:$0 sm:$0xff]  ;;  %v71_v51 = vld [vmem:[%s3949_s0 + $0x38] sm:$0xff] }
  0x1b   :  { %2210 = vmatprep.subr.mxu0 %v40_v13  ;;  %2255 = vmatpush3.msra.mxu1 %v3087_v14  ;;  %v68_v47 = vld [vmem:[%s3949_s0 + $0x20] sm:$0xff] }
  0x1c   :  { %2211 = vmatpush3.msra.mxu0 %v40_v13  ;;  %2256 = vmatprep.subr.mxu1 %v3008_v0 }
  0x1d   :  { %2212 = vmatprep.subr.mxu0 %v39_v15  ;;  %2257 = vmatpush3.msra.mxu1 %v3094_v16 }
  0x1e   :  { %2213 = vmatpush3.msra.mxu0 %v39_v15  ;;  %2258 = vmatprep.subr.mxu1 %v3008_v0 }
  0x1f   :  { %2214 = vmatprep.subr.mxu0 %v38_v17  ;;  %2259 = vmatpush3.msra.mxu1 %v3101_v18 }
  0x20   :  { %2215 = vmatpush3.msra.mxu0 %v38_v17  ;;  %2260 = vmatprep.subr.mxu1 %v3008_v0 }
  0x21   :  { %2216 = vmatprep.subr.mxu0 %v37_v19  ;;  %2261 = vmatpush3.msra.mxu1 %v3108_v20 }
  0x22   :  { %2217 = vmatpush3.msra.mxu0 %v37_v19  ;;  %2262 = vmatprep.subr.mxu1 %v3008_v0 }
  0x23   :  { %2218 = vmatprep.subr.mxu0 %v36_v21  ;;  %2263 = vmatpush3.msra.mxu1 %v3115_v22 }
  0x24   :  { %2219 = vmatpush3.msra.mxu0 %v36_v21  ;;  %2264 = vmatprep.subr.mxu1 %v3008_v0 }
  0x25   :  { %2220 = vmatprep.subr.mxu0 %v35_v23  ;;  %2265 = vmatpush3.msra.mxu1 %v3122_v24 }
  0x26   :  { %2221 = vmatpush3.msra.mxu0 %v35_v23  ;;  %2266 = vmatprep.subr.mxu1 %v3008_v0 }
  0x27   :  { %2222 = vmatprep.subr.mxu0 %v34_v25  ;;  %2267 = vmatpush3.msra.mxu1 %v3129_v26 }
  0x28   :  { %2223 = vmatpush3.msra.mxu0 %v34_v25  ;;  %2268 = vmatprep.subr.mxu1 %v3008_v0 }
  0x29   :  { %2224 = vmatprep.subr.mxu0 %v33_v27  ;;  %2269 = vmatpush3.msra.mxu1 %v3136_v28 }
  0x2a   :  { %2225 = vmatpush3.msra.mxu0 %v33_v27  ;;  %2270 = vmatprep.subr.mxu1 %v3008_v0 }
  0x2b   :  { %2226 = vmatprep.subr.mxu0 %v32_v29  ;;  %2230 = vmatprep.mubr.f32.mxu0 %v64_v30 }
  0x2c   :  { %2227 = vmatpush3.msra.mxu0 %v32_v29  ;;  %2271 = vmatpush3.msra.mxu1 %v3147_v31 }
  0x2d   :  { %2228 = vmatprep.subr.mxu0 %v31_v32  ;;  %2272 = vmatprep.subr.mxu1 %v3008_v0 }
  0x2e   :  { %2229 = vmatpush3.msra.mxu0 %v31_v32  ;;  %2273 = vmatpush3.msra.mxu1 %v3153_v33 }
  0x2f   :  { %2231 = vmatmul.mubr.f32.vlgmr.msra.gmra.mxu0 %v65_v34  ;;  %2275 = vmatmul.mubr.f32.vlgmr.msra.gmra.mxu1 %v3008_v0 }
  0x30   :  { %2277 = vmatprep.subr.mxu0 %v3008_v0  ;;  %2312 = vmatprep.subr.mxu1 %v3008_v0 }
  0x31   :  { %2278 = vmatpush3.msra.mxu0 %v3050_v3  ;;  %2313 = vmatpush3.msra.mxu1 %v3050_v3 }
  0x32   :  { %2279 = vmatprep.subr.mxu0 %v3008_v0  ;;  %2314 = vmatprep.subr.mxu1 %v3008_v0 }
  0x33   :  { %2280 = vmatpush3.msra.mxu0 %v3053_v4  ;;  %2315 = vmatpush3.msra.mxu1 %v3053_v4 }
  0x34   :  { %2281 = vmatprep.subr.mxu0 %v3008_v0  ;;  %2316 = vmatprep.subr.mxu1 %v3008_v0 }
  0x35   :  { %2282 = vmatpush3.msra.mxu0 %v3059_v6  ;;  %2317 = vmatpush3.msra.mxu1 %v3059_v6 }
  0x36   :  { %2283 = vmatprep.subr.mxu0 %v3008_v0  ;;  %2318 = vmatprep.subr.mxu1 %v3008_v0 }
  0x37   :  { %2284 = vmatpush3.msra.mxu0 %v3066_v8  ;;  %2319 = vmatpush3.msra.mxu1 %v3066_v8 }
  0x38   :  { %2285 = vmatprep.subr.mxu0 %v3008_v0  ;;  %2320 = vmatprep.subr.mxu1 %v3008_v0 }
  0x39   :  { %2286 = vmatpush3.msra.mxu0 %v3073_v10  ;;  %2321 = vmatpush3.msra.mxu1 %v3073_v10 }
  0x3a   :  { %2287 = vmatprep.subr.mxu0 %v3008_v0  ;;  %2322 = vmatprep.subr.mxu1 %v3008_v0 }
  0x3b   :  { %2288 = vmatpush3.msra.mxu0 %v3080_v12  ;;  %2323 = vmatpush3.msra.mxu1 %v3080_v12 }
  0x3c   :  { %2289 = vmatprep.subr.mxu0 %v3008_v0  ;;  %2324 = vmatprep.subr.mxu1 %v3008_v0 }
  0x3d   :  { %2290 = vmatpush3.msra.mxu0 %v3087_v14  ;;  %2325 = vmatpush3.msra.mxu1 %v3087_v14 }
  0x3e   :  { %2291 = vmatprep.subr.mxu0 %v3008_v0  ;;  %2326 = vmatprep.subr.mxu1 %v3008_v0 }
  0x3f   :  { %2292 = vmatpush3.msra.mxu0 %v3094_v16  ;;  %2327 = vmatpush3.msra.mxu1 %v3094_v16 }
  0x40   :  { %2293 = vmatprep.subr.mxu0 %v3008_v0  ;;  %2328 = vmatprep.subr.mxu1 %v3008_v0 }
  0x41   :  { %2294 = vmatpush3.msra.mxu0 %v3101_v18  ;;  %2329 = vmatpush3.msra.mxu1 %v3101_v18 }
  0x42   :  { %2295 = vmatprep.subr.mxu0 %v3008_v0  ;;  %2330 = vmatprep.subr.mxu1 %v3008_v0 }
  0x43   :  { %2296 = vmatpush3.msra.mxu0 %v3108_v20  ;;  %2331 = vmatpush3.msra.mxu1 %v3108_v20 }
  0x44   :  { %2297 = vmatprep.subr.mxu0 %v3008_v0  ;;  %2332 = vmatprep.subr.mxu1 %v3008_v0 }
  0x45   :  { %2298 = vmatpush3.msra.mxu0 %v3115_v22  ;;  %2333 = vmatpush3.msra.mxu1 %v3115_v22 }
  0x46   :  { %2299 = vmatprep.subr.mxu0 %v3008_v0  ;;  %2334 = vmatprep.subr.mxu1 %v3008_v0 }
  0x47   :  { %2300 = vmatpush3.msra.mxu0 %v3122_v24  ;;  %2335 = vmatpush3.msra.mxu1 %v3122_v24 }
  0x48   :  { %2301 = vmatprep.subr.mxu0 %v3008_v0  ;;  %2336 = vmatprep.subr.mxu1 %v3008_v0 }
  0x49   :  { %2302 = vmatpush3.msra.mxu0 %v3129_v26  ;;  %2337 = vmatpush3.msra.mxu1 %v3129_v26 }
  0x4a   :  { %2303 = vmatprep.subr.mxu0 %v3008_v0  ;;  %2338 = vmatprep.subr.mxu1 %v3008_v0 }
  0x4b   :  { %2304 = vmatpush3.msra.mxu0 %v3136_v28  ;;  %2339 = vmatpush3.msra.mxu1 %v3136_v28 }
  0x4c   :  { %2305 = vmatprep.subr.mxu0 %v3008_v0  ;;  %2340 = vmatprep.subr.mxu1 %v3008_v0 }
  0x4d   :  { %2306 = vmatpush3.msra.mxu0 %v3147_v31  ;;  %2341 = vmatpush3.msra.mxu1 %v3147_v31 }
  0x4e   :  { %2307 = vmatprep.subr.mxu0 %v3008_v0  ;;  %2342 = vmatprep.subr.mxu1 %v3008_v0 }
  0x4f   :  { %2308 = vmatpush3.msra.mxu0 %v3153_v33  ;;  %2343 = vmatpush3.msra.mxu1 %v3153_v33 }
  0x50   :  { %2344 = vmatprep.mubr.msk.f32.mxu1 %vm3009_vm0, %v3008_v0  ;;  %2347 = vmatprep.subr.mxu0 %v3008_v0 }
  0x51   :  { %2382 = vmatprep.subr.mxu1 %v3008_v0  ;;  %2233 = vmatprep.mubr.f32.mxu0 %v66_v45 }
  0x52   :  { %2234 = vmatmul.mubr.f32.gmra.mxu0 %v67_v46 }
  0x53   :  { %2236 = vmatprep.mubr.f32.mxu0 %v68_v47 }
  0x56   :  { %2237 = vmatmul.mubr.f32.gmra.mxu0 %v69_v48 }
  0x57   :  { %2239 = vmatprep.mubr.f32.mxu0 %v70_v50 }
  0x5a   :  { %2240 = vmatmul.mubr.f32.gmra.mxu0 %v71_v51 }
  0x5b   :  { %2309 = vmatprep.mubr.msk.f32.mxu0 %vm3009_vm0, %v3008_v0 }
  0xef   :  { %v3230_v35 = vpop.f32.mrf.mxu0  ;;  %v258_v36 = vpop.f32.mrf.mxu1 }
  0xf0   :  { %v150_v7 = vadd.f32 %v3230_v35, %v3235_v37 }
  0xf1   :  { %v144_v38 = vpop.f32.mrf.mxu0  ;;  %v2276_v39 = vpop.f32.mrf.mxu1 }
  0xf2   :  { %v145_v40 = vadd.f32 %v3235_v37, %v144_v38 }
  0xf4   :  { %v262_v41 = vadd.f32 %v258_v36, %v145_v40 }
  0xf6   :  { %v1837_v42 = vmul.f32 -1.442695, %v262_v41 }
  0xf8   :  { %2854 = vpow2.f32 %v1837_v42 }
 0x105   :  { %v2855_v43 = vpop.eup %2854 }
 0x106   :  { %v266_v44 = vadd.f32 1.0, %v2855_v43 }
 0x108   :  { %2856 = vrcp.f32 %v266_v44 }
 0x109   :  { %2858 = vtanh.f32 %v262_v41 }
 0x112   :  { %v3301_v61 = vpop.f32.mrf.mxu0 }
 0x114   :  { %v3303_v62 = vpop.f32.mrf.mxu0 }
 0x115   :  { %v2857_v49 = vpop.eup %2856  ;;  %v155_v38 = vadd.f32 %v3235_v37, %v3303_v62 }
 0x116   :  { %274 = vrot.lane.b32.xlu1 %v2857_v49, %s3010_s16  ;;  %270 = vrot.lane.b32.xlu0 %v2857_v49, %s3011_s17  ;;  %v2859_v52 = vpop.eup %2858  ;;  %v3305_v63 = vpop.f32.mrf.mxu0 }
 0x118   :  { %v3307_v1 = vpop.f32.mrf.mxu0 }
 0x11a   :  { %272 = vrot.lane.b32.xlu0 %v2859_v52, %s3012_s20  ;;  %v3309_v2 = vpop.f32.mrf.mxu0 }
 0x11c   :  { %v3311_v5 = vpop.f32.mrf.mxu0 }
 0x188   :  { %v271_v53 = vpop.permute.xlu0 %270  ;;  %v275_v59 = vpop.permute.xlu1 %274 }
 0x189   :  { %v276_v55 = vmul.f32 0.0, %v271_v53 }
 0x18c   :  { %v273_v54 = vpop.permute.xlu0 %272 }
 0x18d   :  { %v277_v56 = vmul.f32 %v2857_v49, %v273_v54 }
 0x18f   :  { %v3261_v57 = vadd.f32 %v277_v56, %v276_v55  ;;  %v160_v55 = vadd.f32 %v3301_v61, %v3235_v37 }
 0x191   :  { %2860 = vtanh.f32 %v3261_v57 }
 0x19e   :  { %v2861_v58 = vpop.eup %2860 }
 0x19f   :  { %v3264_v60 = vmul.f32 %v2861_v58, %v275_v59 }
 0x1a1   :  { %2310 = vmatmul.mubr.f32.vlgmr.msra.gmra.mxu0 %v3264_v60 }
 0x1a2   :  { %2348 = vmatpush3.msra.mxu0 %v3050_v3  ;;  %2379 = vmatprep.mubr.msk.f32.mxu0 %vm3009_vm0, %v3008_v0 }
 0x1a3   :  { %2349 = vmatprep.subr.mxu0 %v3008_v0 }
 0x1a4   :  { %2350 = vmatpush3.msra.mxu0 %v3053_v4 }
 0x1a5   :  { %2351 = vmatprep.subr.mxu0 %v3008_v0 }
 0x1a6   :  { %2352 = vmatpush3.msra.mxu0 %v3059_v6 }
 0x1a7   :  { %2353 = vmatprep.subr.mxu0 %v3008_v0 }
 0x1a8   :  { %2354 = vmatpush3.msra.mxu0 %v3066_v8 }
 0x1a9   :  { %2355 = vmatprep.subr.mxu0 %v3008_v0 }
 0x1aa   :  { %2356 = vmatpush3.msra.mxu0 %v3073_v10 }
 0x1ab   :  { %2357 = vmatprep.subr.mxu0 %v3008_v0 }
 0x1ac   :  { %2358 = vmatpush3.msra.mxu0 %v3080_v12 }
 0x1ad   :  { %2359 = vmatprep.subr.mxu0 %v3008_v0 }
 0x1ae   :  { %2360 = vmatpush3.msra.mxu0 %v3087_v14 }
 0x1af   :  { %2361 = vmatprep.subr.mxu0 %v3008_v0 }
 0x1b0   :  { %2362 = vmatpush3.msra.mxu0 %v3094_v16 }
 0x1b1   :  { %2363 = vmatprep.subr.mxu0 %v3008_v0 }
 0x1b2   :  { %2364 = vmatpush3.msra.mxu0 %v3101_v18 }
 0x1b3   :  { %2365 = vmatprep.subr.mxu0 %v3008_v0 }
 0x1b4   :  { %2366 = vmatpush3.msra.mxu0 %v3108_v20 }
 0x1b5   :  { %2367 = vmatprep.subr.mxu0 %v3008_v0 }
 0x1b6   :  { %2368 = vmatpush3.msra.mxu0 %v3115_v22 }
 0x1b7   :  { %2369 = vmatprep.subr.mxu0 %v3008_v0 }
 0x1b8   :  { %2370 = vmatpush3.msra.mxu0 %v3122_v24 }
 0x1b9   :  { %2371 = vmatprep.subr.mxu0 %v3008_v0 }
 0x1ba   :  { %2372 = vmatpush3.msra.mxu0 %v3129_v26 }
 0x1bb   :  { %2373 = vmatprep.subr.mxu0 %v3008_v0 }
 0x1bc   :  { %2374 = vmatpush3.msra.mxu0 %v3136_v28 }
 0x1bd   :  { %2375 = vmatprep.subr.mxu0 %v3008_v0 }
 0x1be   :  { %2376 = vmatpush3.msra.mxu0 %v3147_v31 }
 0x1bf   :  { %2377 = vmatprep.subr.mxu0 %v3008_v0 }
 0x1c0   :  { %2378 = vmatpush3.msra.mxu0 %v3153_v33 }
 0x1c1   :  { %2417 = vmatprep.subr.mxu0 %v3008_v0 }
 0x261   :  { %v350_v9 = vpop.f32.mrf.mxu0 }
 0x262   :  { %v354_v11 = vadd.f32 %v350_v9, %v150_v7 }
 0x263   :  { %v2311_v13 = vpop.f32.mrf.mxu0 }
 0x264   :  { %v1838_v15 = vmul.f32 -1.442695, %v354_v11  ;;  %2862 = vtanh.f32 %v354_v11 }
 0x266   :  { %2864 = vpow2.f32 %v1838_v15 }
 0x271   :  { %v2863_v17 = vpop.eup %2862 }
 0x272   :  { %364 = vrot.lane.b32.xlu0 %v2863_v17, %s3012_s20 }
 0x273   :  { %v2865_v19 = vpop.eup %2864 }
 0x274   :  { %v358_v21 = vadd.f32 1.0, %v2865_v19 }
 0x276   :  { %2866 = vrcp.f32 %v358_v21 }
 0x283   :  { %v2867_v23 = vpop.eup %2866 }
 0x284   :  { %362 = vrot.lane.b32.xlu1 %v2867_v23, %s3011_s17 }
 0x288   :  { %366 = vrot.lane.b32.xlu1 %v2867_v23, %s3010_s16 }
 0x2e4   :  { %v365_v25 = vpop.permute.xlu0 %364 }
 0x2e5   :  { %v369_v29 = vmul.f32 %v2867_v23, %v365_v25 }
 0x2f6   :  { %v363_v27 = vpop.permute.xlu1 %362 }
 0x2f7   :  { %v368_v30 = vmul.f32 %v363_v27, %v3261_v57  ;;  %v165_v27 = vadd.f32 %v3235_v37, %v3307_v1 }
 0x2f9   :  { %v370_v32 = vadd.f32 %v369_v29, %v368_v30 }
 0x2fa   :  { %v367_v35 = vpop.permute.xlu1 %366 }
 0x2fb   :  { %2868 = vtanh.f32 %v370_v32 }
 0x308   :  { %v2869_v34 = vpop.eup %2868 }
 0x309   :  { %v3319_v36 = vmul.f32 %v2869_v34, %v367_v35 }
 0x30b   :  { %2345 = vmatmul.mubr.f32.vlgmr.msra.gmra.mxu1 %v3319_v36 }
 0x30c   :  { %2383 = vmatpush3.msra.mxu1 %v3050_v3  ;;  %2414 = vmatprep.mubr.msk.f32.mxu1 %vm3009_vm0, %v3008_v0 }
 0x30d   :  { %2384 = vmatprep.subr.mxu1 %v3008_v0 }
 0x30e   :  { %2385 = vmatpush3.msra.mxu1 %v3053_v4 }
 0x30f   :  { %2386 = vmatprep.subr.mxu1 %v3008_v0 }
 0x310   :  { %2387 = vmatpush3.msra.mxu1 %v3059_v6 }
 0x311   :  { %2388 = vmatprep.subr.mxu1 %v3008_v0 }
 0x312   :  { %2389 = vmatpush3.msra.mxu1 %v3066_v8 }
 0x313   :  { %2390 = vmatprep.subr.mxu1 %v3008_v0 }
 0x314   :  { %2391 = vmatpush3.msra.mxu1 %v3073_v10 }
 0x315   :  { %2392 = vmatprep.subr.mxu1 %v3008_v0 }
 0x316   :  { %2393 = vmatpush3.msra.mxu1 %v3080_v12 }
 0x317   :  { %2394 = vmatprep.subr.mxu1 %v3008_v0 }
 0x318   :  { %2395 = vmatpush3.msra.mxu1 %v3087_v14 }
 0x319   :  { %2396 = vmatprep.subr.mxu1 %v3008_v0 }
 0x31a   :  { %2397 = vmatpush3.msra.mxu1 %v3094_v16 }
 0x31b   :  { %2398 = vmatprep.subr.mxu1 %v3008_v0 }
 0x31c   :  { %2399 = vmatpush3.msra.mxu1 %v3101_v18 }
 0x31d   :  { %2400 = vmatprep.subr.mxu1 %v3008_v0 }
 0x31e   :  { %2401 = vmatpush3.msra.mxu1 %v3108_v20 }
 0x31f   :  { %2402 = vmatprep.subr.mxu1 %v3008_v0 }
 0x320   :  { %2403 = vmatpush3.msra.mxu1 %v3115_v22 }
 0x321   :  { %2404 = vmatprep.subr.mxu1 %v3008_v0 }
 0x322   :  { %2405 = vmatpush3.msra.mxu1 %v3122_v24 }
 0x323   :  { %2406 = vmatprep.subr.mxu1 %v3008_v0 }
 0x324   :  { %2407 = vmatpush3.msra.mxu1 %v3129_v26 }
 0x325   :  { %2408 = vmatprep.subr.mxu1 %v3008_v0 }
 0x326   :  { %2409 = vmatpush3.msra.mxu1 %v3136_v28 }
 0x327   :  { %2410 = vmatprep.subr.mxu1 %v3008_v0 }
 0x328   :  { %2411 = vmatpush3.msra.mxu1 %v3147_v31 }
 0x329   :  { %2412 = vmatprep.subr.mxu1 %v3008_v0 }
 0x32a   :  { %2413 = vmatpush3.msra.mxu1 %v3153_v33 }
 0x32b   :  { %2452 = vmatprep.subr.mxu1 %v3008_v0 }
 0x3cb   :  { %v443_v39 = vpop.f32.mrf.mxu1 }
 0x3cc   :  { %v447_v40 = vadd.f32 %v443_v39, %v155_v38 }
 0x3cd   :  { %v2346_v41 = vpop.f32.mrf.mxu1 }
 0x3ce   :  { %v1839_v42 = vmul.f32 -1.442695, %v447_v40  ;;  %2870 = vtanh.f32 %v447_v40 }
 0x3d0   :  { %2872 = vpow2.f32 %v1839_v42 }
 0x3db   :  { %v2871_v43 = vpop.eup %2870 }
 0x3dc   :  { %457 = vrot.lane.b32.xlu1 %v2871_v43, %s3012_s20 }
 0x3dd   :  { %v2873_v44 = vpop.eup %2872 }
 0x3de   :  { %v451_v45 = vadd.f32 1.0, %v2873_v44 }
 0x3e0   :  { %2874 = vrcp.f32 %v451_v45 }
 0x3ed   :  { %v2875_v46 = vpop.eup %2874 }
 0x3ee   :  { %455 = vrot.lane.b32.xlu0 %v2875_v46, %s3011_s17 }
 0x3f2   :  { %459 = vrot.lane.b32.xlu0 %v2875_v46, %s3010_s16 }
 0x44e   :  { %v458_v47 = vpop.permute.xlu1 %457 }
 0x44f   :  { %v462_v49 = vmul.f32 %v2875_v46, %v458_v47 }
 0x460   :  { %v456_v48 = vpop.permute.xlu0 %455 }
 0x461   :  { %v461_v50 = vmul.f32 %v456_v48, %v370_v32 }
 0x463   :  { %v463_v51 = vadd.f32 %v462_v49, %v461_v50  ;;  %v1859_v49 = vld [vmem:[%s3950_s1 + $0xf0] sm:$0xff]  ;;  %v1858_v50 = vld [vmem:[%s3950_s1 + $0xe8] sm:$0xff] }
 0x464   :  { %v460_v53 = vpop.permute.xlu0 %459 }
 0x465   :  { %2876 = vtanh.f32 %v463_v51 }
 0x472   :  { %v2877_v52 = vpop.eup %2876 }
 0x473   :  { %v3361_v54 = vmul.f32 %v2877_v52, %v460_v53  ;;  %v1856_v52 = vld [vmem:[%s3950_s1 + $0xd8] sm:$0xff]  ;;  %v1854_v53 = vld [vmem:[%s3950_s1 + $0xc8] sm:$0xff] }
 0x475   :  { %2380 = vmatmul.mubr.f32.vlgmr.msra.gmra.mxu0 %v3361_v54 }
 0x476   :  { %2418 = vmatpush3.msra.mxu0 %v3050_v3  ;;  %2449 = vmatprep.mubr.msk.f32.mxu0 %vm3009_vm0, %v3008_v0 }
 0x477   :  { %2419 = vmatprep.subr.mxu0 %v3008_v0 }
 0x478   :  { %2420 = vmatpush3.msra.mxu0 %v3053_v4 }
 0x479   :  { %2421 = vmatprep.subr.mxu0 %v3008_v0 }
 0x47a   :  { %2422 = vmatpush3.msra.mxu0 %v3059_v6 }
 0x47b   :  { %2423 = vmatprep.subr.mxu0 %v3008_v0 }
 0x47c   :  { %2424 = vmatpush3.msra.mxu0 %v3066_v8 }
 0x47d   :  { %2425 = vmatprep.subr.mxu0 %v3008_v0 }
 0x47e   :  { %2426 = vmatpush3.msra.mxu0 %v3073_v10 }
 0x47f   :  { %2427 = vmatprep.subr.mxu0 %v3008_v0 }
 0x480   :  { %2428 = vmatpush3.msra.mxu0 %v3080_v12 }
 0x481   :  { %2429 = vmatprep.subr.mxu0 %v3008_v0 }
 0x482   :  { %2430 = vmatpush3.msra.mxu0 %v3087_v14 }
 0x483   :  { %2431 = vmatprep.subr.mxu0 %v3008_v0 }
 0x484   :  { %2432 = vmatpush3.msra.mxu0 %v3094_v16 }
 0x485   :  { %2433 = vmatprep.subr.mxu0 %v3008_v0 }
 0x486   :  { %2434 = vmatpush3.msra.mxu0 %v3101_v18 }
 0x487   :  { %2435 = vmatprep.subr.mxu0 %v3008_v0 }
 0x488   :  { %2436 = vmatpush3.msra.mxu0 %v3108_v20 }
 0x489   :  { %2437 = vmatprep.subr.mxu0 %v3008_v0 }
 0x48a   :  { %2438 = vmatpush3.msra.mxu0 %v3115_v22 }
 0x48b   :  { %2439 = vmatprep.subr.mxu0 %v3008_v0 }
 0x48c   :  { %2440 = vmatpush3.msra.mxu0 %v3122_v24 }
 0x48d   :  { %2441 = vmatprep.subr.mxu0 %v3008_v0 }
 0x48e   :  { %2442 = vmatpush3.msra.mxu0 %v3129_v26 }
 0x48f   :  { %2443 = vmatprep.subr.mxu0 %v3008_v0 }
 0x490   :  { %2444 = vmatpush3.msra.mxu0 %v3136_v28 }
 0x491   :  { %2445 = vmatprep.subr.mxu0 %v3008_v0 }
 0x492   :  { %2446 = vmatpush3.msra.mxu0 %v3147_v31 }
 0x493   :  { %2447 = vmatprep.subr.mxu0 %v3008_v0 }
 0x494   :  { %2448 = vmatpush3.msra.mxu0 %v3153_v33 }
 0x495   :  { %2487 = vmatprep.subr.mxu0 %v3008_v0 }
 0x535   :  { %v536_v56 = vpop.f32.mrf.mxu0 }
 0x536   :  { %v540_v57 = vadd.f32 %v536_v56, %v160_v55  ;;  %v1853_v55 = vld [vmem:[%s3950_s1 + $0xc0] sm:$0xff]  ;;  %v1852_v56 = vld [vmem:[%s3950_s1 + $0xb8] sm:$0xff] }
 0x537   :  { %v2381_v58 = vpop.f32.mrf.mxu0 }
 0x538   :  { %v1840_v59 = vmul.f32 -1.442695, %v540_v57  ;;  %2878 = vtanh.f32 %v540_v57  ;;  %v1851_v57 = vld [vmem:[%s3950_s1 + $0xb0] sm:$0xff]  ;;  %v1850_v58 = vld [vmem:[%s3950_s1 + $0xa8] sm:$0xff] }
 0x53a   :  { %2880 = vpow2.f32 %v1840_v59  ;;  %v1849_v59 = vld [vmem:[%s3950_s1 + $0xa0] sm:$0xff] }
 0x545   :  { %v2879_v62 = vpop.eup %2878 }
 0x546   :  { %550 = vrot.lane.b32.xlu0 %v2879_v62, %s3012_s20  ;;  %v1848_v62 = vld [vmem:[%s3950_s1 + $0x98] sm:$0xff] }
 0x547   :  { %v2881_v7 = vpop.eup %2880 }
 0x548   :  { %v544_v9 = vadd.f32 1.0, %v2881_v7  ;;  %v1847_v7 = vld [vmem:[%s3950_s1 + $0x90] sm:$0xff] }
 0x54a   :  { %2882 = vrcp.f32 %v544_v9  ;;  %v1846_v9 = vld [vmem:[%s3950_s1 + $0x88] sm:$0xff] }
 0x557   :  { %v2883_v11 = vpop.eup %2882 }
 0x558   :  { %548 = vrot.lane.b32.xlu1 %v2883_v11, %s3011_s17 }
 0x55c   :  { %552 = vrot.lane.b32.xlu1 %v2883_v11, %s3010_s16 }
 0x5b8   :  { %v551_v13 = vpop.permute.xlu0 %550 }
 0x5b9   :  { %v555_v61 = vmul.f32 %v2883_v11, %v551_v13  ;;  %v1845_v11 = vld [vmem:[%s3950_s1 + $0x80] sm:$0xff]  ;;  %v175_v13 = vadd.f32 %v3235_v37, %v3311_v5  ;;  %v3555_v5 = vld [vmem:[#allocation4 + $0xe8] sm:$0xff] }
 0x5ca   :  { %v549_v15 = vpop.permute.xlu1 %548 }
 0x5cb   :  { %v554_v17 = vmul.f32 %v549_v15, %v463_v51  ;;  %v1857_v51 = vld [vmem:[%s3950_s1 + $0xe0] sm:$0xff] }
 0x5cd   :  { %v556_v19 = vadd.f32 %v555_v61, %v554_v17 }
 0x5ce   :  { %v553_v23 = vpop.permute.xlu1 %552 }
 0x5cf   :  { %2884 = vtanh.f32 %v556_v19 }
 0x5dc   :  { %v2885_v21 = vpop.eup %2884 }
 0x5dd   :  { %v3403_v25 = vmul.f32 %v2885_v21, %v553_v23 }
 0x5df   :  { %2415 = vmatmul.mubr.f32.vlgmr.msra.gmra.mxu1 %v3403_v25 }
 0x5e0   :  { %2453 = vmatpush3.msra.mxu1 %v3050_v3  ;;  %2484 = vmatprep.mubr.msk.f32.mxu1 %vm3009_vm0, %v3008_v0 }
 0x5e1   :  { %2454 = vmatprep.subr.mxu1 %v3008_v0 }
 0x5e2   :  { %2455 = vmatpush3.msra.mxu1 %v3053_v4 }
 0x5e3   :  { %2456 = vmatprep.subr.mxu1 %v3008_v0 }
 0x5e4   :  { %2457 = vmatpush3.msra.mxu1 %v3059_v6 }
 0x5e5   :  { %2458 = vmatprep.subr.mxu1 %v3008_v0 }
 0x5e6   :  { %2459 = vmatpush3.msra.mxu1 %v3066_v8 }
 0x5e7   :  { %2460 = vmatprep.subr.mxu1 %v3008_v0 }
 0x5e8   :  { %2461 = vmatpush3.msra.mxu1 %v3073_v10 }
 0x5e9   :  { %2462 = vmatprep.subr.mxu1 %v3008_v0 }
 0x5ea   :  { %2463 = vmatpush3.msra.mxu1 %v3080_v12 }
 0x5eb   :  { %2464 = vmatprep.subr.mxu1 %v3008_v0 }
 0x5ec   :  { %2465 = vmatpush3.msra.mxu1 %v3087_v14 }
 0x5ed   :  { %2466 = vmatprep.subr.mxu1 %v3008_v0 }
 0x5ee   :  { %2467 = vmatpush3.msra.mxu1 %v3094_v16 }
 0x5ef   :  { %2468 = vmatprep.subr.mxu1 %v3008_v0 }
 0x5f0   :  { %2469 = vmatpush3.msra.mxu1 %v3101_v18 }
 0x5f1   :  { %2470 = vmatprep.subr.mxu1 %v3008_v0 }
 0x5f2   :  { %2471 = vmatpush3.msra.mxu1 %v3108_v20 }
 0x5f3   :  { %2472 = vmatprep.subr.mxu1 %v3008_v0 }
 0x5f4   :  { %2473 = vmatpush3.msra.mxu1 %v3115_v22 }
 0x5f5   :  { %2474 = vmatprep.subr.mxu1 %v3008_v0 }
 0x5f6   :  { %2475 = vmatpush3.msra.mxu1 %v3122_v24 }
 0x5f7   :  { %2476 = vmatprep.subr.mxu1 %v3008_v0 }
 0x5f8   :  { %2477 = vmatpush3.msra.mxu1 %v3129_v26 }
 0x5f9   :  { %2478 = vmatprep.subr.mxu1 %v3008_v0 }
 0x5fa   :  { %2479 = vmatpush3.msra.mxu1 %v3136_v28 }
 0x5fb   :  { %2480 = vmatprep.subr.mxu1 %v3008_v0 }
 0x5fc   :  { %2481 = vmatpush3.msra.mxu1 %v3147_v31 }
 0x5fd   :  { %2482 = vmatprep.subr.mxu1 %v3008_v0 }
 0x5fe   :  { %2483 = vmatpush3.msra.mxu1 %v3153_v33 }
 0x69f   :  { %v629_v29 = vpop.f32.mrf.mxu1 }
 0x6a0   :  { %v633_v30 = vadd.f32 %v629_v29, %v165_v27  ;;  %v3559_v27 = vld [vmem:[#allocation4 + $0xe0] sm:$0xff]  ;;  %v3563_v29 = vld [vmem:[#allocation4 + $0xd8] sm:$0xff] }
 0x6a1   :  { %v2416_v32 = vpop.f32.mrf.mxu1 }
 0x6a2   :  { %v1841_v34 = vmul.f32 -1.442695, %v633_v30  ;;  %2886 = vtanh.f32 %v633_v30  ;;  %v3567_v30 = vld [vmem:[#allocation4 + $0xd0] sm:$0xff]  ;;  %v3571_v32 = vld [vmem:[#allocation4 + $0xc8] sm:$0xff] }
 0x6a4   :  { %2888 = vpow2.f32 %v1841_v34  ;;  %v3575_v34 = vld [vmem:[#allocation4 + $0xc0] sm:$0xff] }
 0x6af   :  { %v2887_v35 = vpop.eup %2886 }
 0x6b0   :  { %643 = vrot.lane.b32.xlu1 %v2887_v35, %s3012_s20  ;;  %v3579_v35 = vld [vmem:[#allocation4 + $0xb8] sm:$0xff] }
 0x6b1   :  { %v2889_v38 = vpop.eup %2888 }
 0x6b2   :  { %v637_v39 = vadd.f32 1.0, %v2889_v38  ;;  %v3583_v38 = vld [vmem:[#allocation4 + $0xb0] sm:$0xff] }
 0x6b4   :  { %2890 = vrcp.f32 %v637_v39  ;;  %v3587_v39 = vld [vmem:[#allocation4 + $0xa8] sm:$0xff] }
 0x6c1   :  { %v2891_v40 = vpop.eup %2890 }
 0x6c2   :  { %641 = vrot.lane.b32.xlu0 %v2891_v40, %s3011_s17 }
 0x6c6   :  { %645 = vrot.lane.b32.xlu0 %v2891_v40, %s3010_s16 }
 0x722   :  { %v644_v41 = vpop.permute.xlu1 %643 }
 0x723   :  { %v648_v1 = vmul.f32 %v2891_v40, %v644_v41  ;;  %v3591_v40 = vld [vmem:[#allocation4 + $0xa0] sm:$0xff]  ;;  %v3595_v41 = vld [vmem:[#allocation4 + $0x98] sm:$0xff] }
 0x734   :  { %v642_v42 = vpop.permute.xlu0 %641 }
 0x735   :  { %v647_v43 = vmul.f32 %v642_v42, %v556_v19  ;;  %v3599_v42 = vld [vmem:[#allocation4 + $0x90] sm:$0xff] }
 0x737   :  { %v649_v44 = vadd.f32 %v648_v1, %v647_v43  ;;  %v3603_v1 = vld [vmem:[#allocation4 + $0x88] sm:$0xff]  ;;  %v3607_v43 = vld [vmem:[#allocation4 + $0x80] sm:$0xff] }
 0x738   :  { %v646_v46 = vpop.permute.xlu0 %645 }
 0x739   :  { %2892 = vtanh.f32 %v649_v44 }
 0x746   :  { %v2893_v45 = vpop.eup %2892 }
 0x747   :  { %v3444_v47 = vmul.f32 %v2893_v45, %v646_v46 }
 0x749   :  { %2450 = vmatmul.mubr.f32.vlgmr.msra.gmra.mxu0 %v3444_v47 }
 0x74a   :  { %2488 = vmatpush3.msra.mxu0 %v3050_v3  ;;  %2519 = vmatprep.mubr.msk.f32.mxu0 %vm3009_vm0, %v3008_v0  ;;  %v170_v3 = vadd.f32 %v3305_v63, %v3235_v37  ;;  %v3551_v37 = vld [vmem:[#allocation4 + $0xf0] sm:$0xff] }
 0x74b   :  { %2489 = vmatprep.subr.mxu0 %v3008_v0 }
 0x74c   :  { %2490 = vmatpush3.msra.mxu0 %v3053_v4 }
 0x74d   :  { %2491 = vmatprep.subr.mxu0 %v3008_v0 }
 0x74e   :  { %2492 = vmatpush3.msra.mxu0 %v3059_v6 }
 0x74f   :  { %2493 = vmatprep.subr.mxu0 %v3008_v0 }
 0x750   :  { %2494 = vmatpush3.msra.mxu0 %v3066_v8 }
 0x751   :  { %2495 = vmatprep.subr.mxu0 %v3008_v0 }
 0x752   :  { %2496 = vmatpush3.msra.mxu0 %v3073_v10 }
 0x753   :  { %2497 = vmatprep.subr.mxu0 %v3008_v0 }
 0x754   :  { %2498 = vmatpush3.msra.mxu0 %v3080_v12 }
 0x755   :  { %2499 = vmatprep.subr.mxu0 %v3008_v0 }
 0x756   :  { %2500 = vmatpush3.msra.mxu0 %v3087_v14 }
 0x757   :  { %2501 = vmatprep.subr.mxu0 %v3008_v0 }
 0x758   :  { %2502 = vmatpush3.msra.mxu0 %v3094_v16 }
 0x759   :  { %2503 = vmatprep.subr.mxu0 %v3008_v0 }
 0x75a   :  { %2504 = vmatpush3.msra.mxu0 %v3101_v18 }
 0x75b   :  { %2505 = vmatprep.subr.mxu0 %v3008_v0 }
 0x75c   :  { %2506 = vmatpush3.msra.mxu0 %v3108_v20  ;;  %v1860_v20 = vld [vmem:[%s3950_s1 + $0xf8] sm:$0xff] }
 0x75d   :  { %2507 = vmatprep.subr.mxu0 %v3008_v0  ;;  %2522 = vmatprep.subr.mxu1 %v1860_v20 }
 0x75e   :  { %2508 = vmatpush3.msra.mxu0 %v3115_v22 }
 0x75f   :  { %2509 = vmatprep.subr.mxu0 %v3008_v0 }
 0x760   :  { %2510 = vmatpush3.msra.mxu0 %v3122_v24 }
 0x761   :  { %2511 = vmatprep.subr.mxu0 %v3008_v0 }
 0x762   :  { %2512 = vmatpush3.msra.mxu0 %v3129_v26 }
 0x763   :  { %2513 = vmatprep.subr.mxu0 %v3008_v0 }
 0x764   :  { %2514 = vmatpush3.msra.mxu0 %v3136_v28 }
 0x765   :  { %2515 = vmatprep.subr.mxu0 %v3008_v0 }
 0x766   :  { %2516 = vmatpush3.msra.mxu0 %v3147_v31 }
 0x767   :  { %2517 = vmatprep.subr.mxu0 %v3008_v0 }
 0x768   :  { %2518 = vmatpush3.msra.mxu0 %v3153_v33 }
 0x769   :  { %2566 = vmatprep.subr.mxu0 %v3008_v0 }
 0x809   :  { %v722_v4 = vpop.f32.mrf.mxu0 }
 0x80a   :  { %v726_v6 = vadd.f32 %v722_v4, %v170_v3 }
 0x80b   :  { %v2451_v8 = vpop.f32.mrf.mxu0 }
 0x80c   :  { %v1842_v10 = vmul.f32 -1.442695, %v726_v6  ;;  %2894 = vtanh.f32 %v726_v6 }
 0x80e   :  { %2896 = vpow2.f32 %v1842_v10  ;;  %v2982_v10 = vld [vmem:[%s3952_s3] ss:$0 sm:$0xff] }
 0x819   :  { %v2895_v12 = vpop.eup %2894 }
 0x81a   :  { %736 = vrot.lane.b32.xlu0 %v2895_v12, %s3012_s20  ;;  %v180_v12 = vadd.f32 %v2982_v10, %v3309_v2 }
 0x81b   :  { %v2897_v14 = vpop.eup %2896 }
 0x81c   :  { %v730_v16 = vadd.f32 1.0, %v2897_v14 }
 0x81e   :  { %2898 = vrcp.f32 %v730_v16 }
 0x82b   :  { %v2899_v18 = vpop.eup %2898 }
 0x82c   :  { %734 = vrot.lane.b32.xlu1 %v2899_v18, %s3011_s17 }
 0x830   :  { %738 = vrot.lane.b32.xlu1 %v2899_v18, %s3010_s16 }
 0x88c   :  { %v737_v22 = vpop.permute.xlu0 %736 }
 0x88d   :  { %v741_v26 = vmul.f32 %v2899_v18, %v737_v22 }
 0x89e   :  { %v735_v24 = vpop.permute.xlu1 %734 }
 0x89f   :  { %v740_v28 = vmul.f32 %v735_v24, %v649_v44 }
 0x8a1   :  { %v3489_v31 = vadd.f32 %v741_v26, %v740_v28 }
 0x8a2   :  { %v739_v63 = vpop.permute.xlu1 %738 }
 0x8a3   :  { %2900 = vtanh.f32 %v3489_v31 }
 0x8b0   :  { %v2901_v33 = vpop.eup %2900 }
 0x8b1   :  { %v744_v48 = vmul.f32 %v2901_v33, %v739_v63  ;;  %v3695_v33 = vld [vmem:[%s3952_s3 + $0x1] ss:$0 sm:$0xff] }
 0x8b3   :  { %2485 = vmatmul.mubr.f32.vlgmr.msra.gmra.mxu1 %v744_v48 }
 0x8b4   :  { %2523 = vmatpush3.msra.mxu1 %v1860_v20  ;;  %2554 = vmatprep.mubr.f32.mxu1 %v3264_v60  ;;  %v1855_v60 = vld [vmem:[%s3950_s1 + $0xd0] sm:$0xff] }
 0x8b5   :  { %2524 = vmatprep.subr.mxu1 %v1859_v49 }
 0x8b6   :  { %2525 = vmatpush3.msra.mxu1 %v1859_v49 }
 0x8b7   :  { %2526 = vmatprep.subr.mxu1 %v1858_v50 }
 0x8b8   :  { %2527 = vmatpush3.msra.mxu1 %v1858_v50 }
 0x8b9   :  { %2528 = vmatprep.subr.mxu1 %v1857_v51 }
 0x8ba   :  { %2529 = vmatpush3.msra.mxu1 %v1857_v51 }
 0x8bb   :  { %2530 = vmatprep.subr.mxu1 %v1856_v52 }
 0x8bc   :  { %2531 = vmatpush3.msra.mxu1 %v1856_v52 }
 0x8bd   :  { %2532 = vmatprep.subr.mxu1 %v1855_v60 }
 0x8be   :  { %2533 = vmatpush3.msra.mxu1 %v1855_v60 }
 0x8bf   :  { %2534 = vmatprep.subr.mxu1 %v1854_v53 }
 0x8c0   :  { %2535 = vmatpush3.msra.mxu1 %v1854_v53 }
 0x8c1   :  { %2536 = vmatprep.subr.mxu1 %v1853_v55 }
 0x8c2   :  { %2537 = vmatpush3.msra.mxu1 %v1853_v55 }
 0x8c3   :  { %2538 = vmatprep.subr.mxu1 %v1852_v56 }
 0x8c4   :  { %2539 = vmatpush3.msra.mxu1 %v1852_v56 }
 0x8c5   :  { %2540 = vmatprep.subr.mxu1 %v1851_v57 }
 0x8c6   :  { %2541 = vmatpush3.msra.mxu1 %v1851_v57 }
 0x8c7   :  { %2542 = vmatprep.subr.mxu1 %v1850_v58 }
 0x8c8   :  { %2543 = vmatpush3.msra.mxu1 %v1850_v58 }
 0x8c9   :  { %2544 = vmatprep.subr.mxu1 %v1849_v59 }
 0x8ca   :  { %2545 = vmatpush3.msra.mxu1 %v1849_v59 }
 0x8cb   :  { %2546 = vmatprep.subr.mxu1 %v1848_v62 }
 0x8cc   :  { %2547 = vmatpush3.msra.mxu1 %v1848_v62 }
 0x8cd   :  { %2548 = vmatprep.subr.mxu1 %v1847_v7 }
 0x8ce   :  { %2549 = vmatpush3.msra.mxu1 %v1847_v7 }
 0x8cf   :  { %2550 = vmatprep.subr.mxu1 %v1846_v9 }
 0x8d0   :  { %2551 = vmatpush3.msra.mxu1 %v1846_v9 }
 0x8d1   :  { %2552 = vmatprep.subr.mxu1 %v1845_v11 }
 0x8d2   :  { %2553 = vmatpush3.msra.mxu1 %v1845_v11 }
 0x8d3   :  { %2555 = vmatmul.mubr.f32.vlgmr.msra.gmra.mxu1 %v3319_v36  ;;  %2601 = vmatprep.subr.mxu1 %v3008_v0 }
 0x8d4   :  { %2557 = vmatprep.mubr.f32.mxu1 %v3361_v54 }
 0x8d7   :  { %2558 = vmatmul.mubr.f32.gmra.mxu1 %v3403_v25  ;;  %v3548_v25 = vld [vmem:[#allocation4 + $0xf8] sm:$0xff] }
 0x8d8   :  { %2560 = vmatprep.mubr.f32.mxu1 %v3444_v47  ;;  %2602 = vmatpush3.msra.mxu1 %v3548_v25 }
 0x8d9   :  { %2603 = vmatprep.subr.mxu1 %v3008_v0 }
 0x8da   :  { %2604 = vmatpush3.msra.mxu1 %v3551_v37 }
 0x8db   :  { %2561 = vmatmul.mubr.f32.gmra.mxu1 %v744_v48  ;;  %2605 = vmatprep.subr.mxu1 %v3008_v0 }
 0x8dc   :  { %2606 = vmatpush3.msra.mxu1 %v3555_v5 }
 0x8dd   :  { %2607 = vmatprep.subr.mxu1 %v3008_v0 }
 0x8de   :  { %2608 = vmatpush3.msra.mxu1 %v3559_v27 }
 0x8df   :  { %2609 = vmatprep.subr.mxu1 %v3008_v0 }
 0x8e0   :  { %2610 = vmatpush3.msra.mxu1 %v3563_v29 }
 0x8e1   :  { %2611 = vmatprep.subr.mxu1 %v3008_v0 }
 0x8e2   :  { %2612 = vmatpush3.msra.mxu1 %v3567_v30 }
 0x8e3   :  { %2613 = vmatprep.subr.mxu1 %v3008_v0 }
 0x8e4   :  { %2614 = vmatpush3.msra.mxu1 %v3571_v32 }
 0x8e5   :  { %2615 = vmatprep.subr.mxu1 %v3008_v0 }
 0x8e6   :  { %2616 = vmatpush3.msra.mxu1 %v3575_v34 }
 0x8e7   :  { %2617 = vmatprep.subr.mxu1 %v3008_v0 }
 0x8e8   :  { %2618 = vmatpush3.msra.mxu1 %v3579_v35 }
 0x8e9   :  { %2619 = vmatprep.subr.mxu1 %v3008_v0 }
 0x8ea   :  { %2620 = vmatpush3.msra.mxu1 %v3583_v38 }
 0x8eb   :  { %2621 = vmatprep.subr.mxu1 %v3008_v0 }
 0x8ec   :  { %2622 = vmatpush3.msra.mxu1 %v3587_v39 }
 0x8ed   :  { %2623 = vmatprep.subr.mxu1 %v3008_v0 }
 0x8ee   :  { %2624 = vmatpush3.msra.mxu1 %v3591_v40 }
 0x8ef   :  { %2625 = vmatprep.subr.mxu1 %v3008_v0 }
 0x8f0   :  { %2626 = vmatpush3.msra.mxu1 %v3595_v41 }
 0x8f1   :  { %2627 = vmatprep.subr.mxu1 %v3008_v0 }
 0x8f2   :  { %2628 = vmatpush3.msra.mxu1 %v3599_v42 }
 0x8f3   :  { %2629 = vmatprep.subr.mxu1 %v3008_v0 }
 0x8f4   :  { %2630 = vmatpush3.msra.mxu1 %v3603_v1 }
 0x8f5   :  { %2631 = vmatprep.subr.mxu1 %v3008_v0 }
 0x8f6   :  { %2632 = vmatpush3.msra.mxu1 %v3607_v43 }
 0x8f7   :  { %2671 = vmatprep.subr.mxu1 %v3008_v0 }
 0x973   :  { %v815_v15 = vpop.f32.mrf.mxu1 }
 0x974   :  { %v819_v61 = vadd.f32 %v815_v15, %v175_v13 }
 0x975   :  { %v2486_v17 = vpop.f32.mrf.mxu1 }
 0x976   :  { %v1843_v19 = vmul.f32 -1.442695, %v819_v61  ;;  %2902 = vtanh.f32 %v819_v61 }
 0x978   :  { %2904 = vpow2.f32 %v1843_v19 }
 0x983   :  { %v2903_v21 = vpop.eup %2902 }
 0x984   :  { %829 = vrot.lane.b32.xlu1 %v2903_v21, %s3012_s20 }
 0x985   :  { %v2905_v36 = vpop.eup %2904 }
 0x986   :  { %v823_v23 = vadd.f32 1.0, %v2905_v36 }
 0x988   :  { %2906 = vrcp.f32 %v823_v23 }
 0x993   :  { %v3690_v28 = vpop.f32.mrf.mxu1 }
 0x995   :  { %v2907_v54 = vpop.eup %2906 }
 0x996   :  { %827 = vrot.lane.b32.xlu0 %v2907_v54, %s3011_s17 }
 0x99a   :  { %831 = vrot.lane.b32.xlu0 %v2907_v54, %s3010_s16 }
 0x9f6   :  { %v830_v44 = vpop.permute.xlu1 %829 }
 0x9f7   :  { %v834_v46 = vmul.f32 %v2907_v54, %v830_v44 }
 0xa08   :  { %v828_v45 = vpop.permute.xlu0 %827 }
 0xa09   :  { %v833_v47 = vmul.f32 %v828_v45, %v3489_v31  ;;  %v1049_v31 = vpop.f32.mrf.mxu1 }
 0xa0a   :  { %v1050_v2 = vadd.f32 %v3695_v33, %v1049_v31 }
 0xa0b   :  { %v3613_v3 = vadd.f32 %v834_v46, %v833_v47  ;;  %v3746_v54 = vpop.f32.mrf.mxu1 }
 0xa0c   :  { %v832_v6 = vpop.permute.xlu0 %831 }
 0xa0d   :  { %2908 = vtanh.f32 %v3613_v3  ;;  %v3748_v44 = vpop.f32.mrf.mxu1 }
 0xa0f   :  { %v3750_v45 = vpop.f32.mrf.mxu1 }
 0xa11   :  { %v3752_v46 = vpop.f32.mrf.mxu1 }
 0xa1a   :  { %v2909_v4 = vpop.eup %2908 }
 0xa1b   :  { %v837_v8 = vmul.f32 %v2909_v4, %v832_v6  ;;  %v1055_v4 = vadd.f32 %v3690_v28, %v3695_v33 }
 0xa1d   :  { %2520 = vmatmul.mubr.f32.vlgmr.msra.gmra.mxu0 %v837_v8  ;;  %2563 = vmatprep.mubr.f32.mxu1 %v837_v8 }
 0xa1e   :  { %2567 = vmatpush3.msra.mxu0 %v3548_v25  ;;  %2598 = vmatprep.mubr.msk.f32.mxu0 %vm3009_vm0, %v3008_v0 }
 0xa1f   :  { %2568 = vmatprep.subr.mxu0 %v3008_v0 }
 0xa20   :  { %2569 = vmatpush3.msra.mxu0 %v3551_v37 }
 0xa21   :  { %2570 = vmatprep.subr.mxu0 %v3008_v0 }
 0xa22   :  { %2571 = vmatpush3.msra.mxu0 %v3555_v5 }
 0xa23   :  { %2572 = vmatprep.subr.mxu0 %v3008_v0 }
 0xa24   :  { %2573 = vmatpush3.msra.mxu0 %v3559_v27 }
 0xa25   :  { %2574 = vmatprep.subr.mxu0 %v3008_v0 }
 0xa26   :  { %2575 = vmatpush3.msra.mxu0 %v3563_v29 }
 0xa27   :  { %2576 = vmatprep.subr.mxu0 %v3008_v0 }
 0xa28   :  { %2577 = vmatpush3.msra.mxu0 %v3567_v30 }
 0xa29   :  { %2578 = vmatprep.subr.mxu0 %v3008_v0 }
 0xa2a   :  { %2579 = vmatpush3.msra.mxu0 %v3571_v32 }
 0xa2b   :  { %2580 = vmatprep.subr.mxu0 %v3008_v0 }
 0xa2c   :  { %2581 = vmatpush3.msra.mxu0 %v3575_v34 }
 0xa2d   :  { %2582 = vmatprep.subr.mxu0 %v3008_v0 }
 0xa2e   :  { %2583 = vmatpush3.msra.mxu0 %v3579_v35 }
 0xa2f   :  { %2584 = vmatprep.subr.mxu0 %v3008_v0 }
 0xa30   :  { %2585 = vmatpush3.msra.mxu0 %v3583_v38 }
 0xa31   :  { %2586 = vmatprep.subr.mxu0 %v3008_v0 }
 0xa32   :  { %2587 = vmatpush3.msra.mxu0 %v3587_v39 }
 0xa33   :  { %2588 = vmatprep.subr.mxu0 %v3008_v0 }
 0xa34   :  { %2589 = vmatpush3.msra.mxu0 %v3591_v40 }
 0xa35   :  { %2590 = vmatprep.subr.mxu0 %v3008_v0 }
 0xa36   :  { %2591 = vmatpush3.msra.mxu0 %v3595_v41 }
 0xa37   :  { %2592 = vmatprep.subr.mxu0 %v3008_v0 }
 0xa38   :  { %2593 = vmatpush3.msra.mxu0 %v3599_v42 }
 0xa39   :  { %2594 = vmatprep.subr.mxu0 %v3008_v0 }
 0xa3a   :  { %2595 = vmatpush3.msra.mxu0 %v3603_v1 }
 0xa3b   :  { %2596 = vmatprep.subr.mxu0 %v3008_v0 }
 0xa3c   :  { %2597 = vmatpush3.msra.mxu0 %v3607_v43 }
 0xa3d   :  { %2599 = vmatmul.mubr.f32.vlgmr.msra.gmra.mxu0 %v3008_v0  ;;  %2636 = vmatprep.subr.mxu0 %v3008_v0 }
 0xa3e   :  { %2637 = vmatpush3.msra.mxu0 %v3548_v25  ;;  %2668 = vmatprep.mubr.msk.f32.mxu0 %vm3009_vm0, %v3008_v0 }
 0xa3f   :  { %2638 = vmatprep.subr.mxu0 %v3008_v0 }
 0xa40   :  { %2639 = vmatpush3.msra.mxu0 %v3551_v37 }
 0xa41   :  { %2640 = vmatprep.subr.mxu0 %v3008_v0 }
 0xa42   :  { %2641 = vmatpush3.msra.mxu0 %v3555_v5 }
 0xa43   :  { %2642 = vmatprep.subr.mxu0 %v3008_v0 }
 0xa44   :  { %2643 = vmatpush3.msra.mxu0 %v3559_v27 }
 0xa45   :  { %2644 = vmatprep.subr.mxu0 %v3008_v0 }
 0xa46   :  { %2645 = vmatpush3.msra.mxu0 %v3563_v29 }
 0xa47   :  { %2646 = vmatprep.subr.mxu0 %v3008_v0 }
 0xa48   :  { %2647 = vmatpush3.msra.mxu0 %v3567_v30 }
 0xa49   :  { %2648 = vmatprep.subr.mxu0 %v3008_v0 }
 0xa4a   :  { %2649 = vmatpush3.msra.mxu0 %v3571_v32 }
 0xa4b   :  { %2650 = vmatprep.subr.mxu0 %v3008_v0 }
 0xa4c   :  { %2651 = vmatpush3.msra.mxu0 %v3575_v34 }
 0xa4d   :  { %2652 = vmatprep.subr.mxu0 %v3008_v0 }
 0xa4e   :  { %2653 = vmatpush3.msra.mxu0 %v3579_v35 }
 0xa4f   :  { %2654 = vmatprep.subr.mxu0 %v3008_v0 }
 0xa50   :  { %2655 = vmatpush3.msra.mxu0 %v3583_v38 }
 0xa51   :  { %2656 = vmatprep.subr.mxu0 %v3008_v0 }
 0xa52   :  { %2657 = vmatpush3.msra.mxu0 %v3587_v39 }
 0xa53   :  { %2658 = vmatprep.subr.mxu0 %v3008_v0 }
 0xa54   :  { %2659 = vmatpush3.msra.mxu0 %v3591_v40 }
 0xa55   :  { %2660 = vmatprep.subr.mxu0 %v3008_v0 }
 0xa56   :  { %2661 = vmatpush3.msra.mxu0 %v3595_v41 }
 0xa57   :  { %2662 = vmatprep.subr.mxu0 %v3008_v0 }
 0xa58   :  { %2663 = vmatpush3.msra.mxu0 %v3599_v42 }
 0xa59   :  { %2664 = vmatprep.subr.mxu0 %v3008_v0 }
 0xa5a   :  { %2665 = vmatpush3.msra.mxu0 %v3603_v1 }
 0xa5b   :  { %2666 = vmatprep.subr.mxu0 %v3008_v0 }
 0xa5c   :  { %2667 = vmatpush3.msra.mxu0 %v3607_v43 }
 0xa5d   :  { %2706 = vmatprep.subr.mxu0 %v3008_v0 }
 0xadd   :  { %v908_v14 = vpop.f32.mrf.mxu0 }
 0xade   :  { %v912_v16 = vadd.f32 %v908_v14, %v180_v12 }
 0xadf   :  { %v2521_v18 = vpop.f32.mrf.mxu0 }
 0xae0   :  { %v1844_v20 = vmul.f32 -1.442695, %v912_v16  ;;  %2910 = vtanh.f32 %v912_v16 }
 0xae2   :  { %2912 = vpow2.f32 %v1844_v20 }
 0xaed   :  { %v2911_v22 = vpop.eup %2910 }
 0xaee   :  { %922 = vrot.lane.b32.xlu0 %v2911_v22, %s3012_s20 }
 0xaef   :  { %v2913_v24 = vpop.eup %2912 }
 0xaf0   :  { %v916_v26 = vadd.f32 1.0, %v2913_v24 }
 0xaf2   :  { %2914 = vrcp.f32 %v916_v26 }
 0xafd   :  { %v1163_v63 = vpop.f32.mrf.mxu0 }
 0xafe   :  { %v1167_v48 = vadd.f32 %v1163_v63, %v1050_v2 }
 0xaff   :  { %v2915_v49 = vpop.eup %2914  ;;  %v2600_v50 = vpop.f32.mrf.mxu0 }
 0xb00   :  { %v1863_v51 = vmul.f32 -1.442695, %v1167_v48  ;;  %2916 = vtanh.f32 %v1167_v48  ;;  %920 = vrot.lane.b32.xlu1 %v2915_v49, %s3011_s17 }
 0xb02   :  { %2918 = vpow2.f32 %v1863_v51 }
 0xb0d   :  { %v2917_v52 = vpop.eup %2916 }
 0xb0e   :  { %1177 = vrot.lane.b32.xlu0 %v2917_v52, %s3012_s20 }
 0xb0f   :  { %v2919_v60 = vpop.eup %2918 }
 0xb10   :  { %v1171_v53 = vadd.f32 1.0, %v2919_v60 }
 0xb12   :  { %2920 = vrcp.f32 %v1171_v53 }
 0xb1f   :  { %v2921_v55 = vpop.eup %2920 }
 0xb20   :  { %1179 = vrot.lane.b32.xlu0 %v2921_v55, %s3010_s16  ;;  %1175 = vrot.lane.b32.xlu1 %v2921_v55, %s3011_s17 }
 0xb24   :  { %924 = vrot.lane.b32.xlu1 %v2915_v49, %s3010_s16 }
 0xb60   :  { %v923_v57 = vpop.permute.xlu0 %922 }
 0xb61   :  { %v927_v59 = vmul.f32 %v2915_v49, %v923_v57  ;;  %v1060_v49 = vadd.f32 %v3695_v33, %v3748_v44 }
 0xb72   :  { %v921_v56 = vpop.permute.xlu1 %920 }
 0xb73   :  { %v926_v58 = vmul.f32 %v921_v56, %v3613_v3 }
 0xb75   :  { %v928_v62 = vadd.f32 %v927_v59, %v926_v58 }
 0xb77   :  { %2922 = vtanh.f32 %v928_v62 }
 0xb80   :  { %v1178_v7 = vpop.permute.xlu0 %1177 }
 0xb81   :  { %v1182_v11 = vmul.f32 %v2921_v55, %v1178_v7 }
 0xb84   :  { %v2923_v61 = vpop.eup %2922 }
 0xb92   :  { %v1176_v9 = vpop.permute.xlu1 %1175  ;;  %v1180_v36 = vpop.permute.xlu0 %1179 }
 0xb93   :  { %v1181_v13 = vmul.f32 0.0, %v1176_v9 }
 0xb95   :  { %v3704_v15 = vadd.f32 %v1182_v11, %v1181_v13 }
 0xb96   :  { %v925_v17 = vpop.permute.xlu1 %924 }
 0xb97   :  { %2924 = vtanh.f32 %v3704_v15  ;;  %v930_v19 = vmul.f32 %v2923_v61, %v925_v17  ;;  %v1065_v61 = vadd.f32 %v3746_v54, %v3695_v33 }
 0xb99   :  { %2564 = vmatmul.mubr.f32.gmra.mxu1 %v930_v19 }
 0xb9a   :  { %2633 = vmatprep.mubr.msk.f32.mxu1 %vm3009_vm0, %v3008_v0 }
 0xba4   :  { %v2925_v21 = vpop.eup %2924 }
 0xba5   :  { %v1185_v23 = vmul.f32 %v2925_v21, %v1180_v36 }
 0xba7   :  { %1186 = vst [vmem:[%s3953_s4] sm:$0xff] %v1185_v23  ;;  %2634 = vmatmul.mubr.f32.vlgmr.msra.gmra.mxu1 %v1185_v23 }
 0xba8   :  { %2672 = vmatpush3.msra.mxu1 %v3548_v25  ;;  %2703 = vmatprep.mubr.msk.f32.mxu1 %vm3009_vm0, %v3008_v0 }
 0xba9   :  { %2673 = vmatprep.subr.mxu1 %v3008_v0 }
 0xbaa   :  { %2674 = vmatpush3.msra.mxu1 %v3551_v37 }
 0xbab   :  { %2675 = vmatprep.subr.mxu1 %v3008_v0 }
 0xbac   :  { %2676 = vmatpush3.msra.mxu1 %v3555_v5 }
 0xbad   :  { %2677 = vmatprep.subr.mxu1 %v3008_v0 }
 0xbae   :  { %2678 = vmatpush3.msra.mxu1 %v3559_v27 }
 0xbaf   :  { %2679 = vmatprep.subr.mxu1 %v3008_v0 }
 0xbb0   :  { %2680 = vmatpush3.msra.mxu1 %v3563_v29 }
 0xbb1   :  { %2681 = vmatprep.subr.mxu1 %v3008_v0 }
 0xbb2   :  { %2682 = vmatpush3.msra.mxu1 %v3567_v30 }
 0xbb3   :  { %2683 = vmatprep.subr.mxu1 %v3008_v0 }
 0xbb4   :  { %2684 = vmatpush3.msra.mxu1 %v3571_v32 }
 0xbb5   :  { %2685 = vmatprep.subr.mxu1 %v3008_v0 }
 0xbb6   :  { %2686 = vmatpush3.msra.mxu1 %v3575_v34 }
 0xbb7   :  { %2687 = vmatprep.subr.mxu1 %v3008_v0 }
 0xbb8   :  { %2688 = vmatpush3.msra.mxu1 %v3579_v35 }
 0xbb9   :  { %2689 = vmatprep.subr.mxu1 %v3008_v0 }
 0xbba   :  { %2690 = vmatpush3.msra.mxu1 %v3583_v38 }
 0xbbb   :  { %2691 = vmatprep.subr.mxu1 %v3008_v0 }
 0xbbc   :  { %2692 = vmatpush3.msra.mxu1 %v3587_v39 }
 0xbbd   :  { %2693 = vmatprep.subr.mxu1 %v3008_v0 }
 0xbbe   :  { %2694 = vmatpush3.msra.mxu1 %v3591_v40 }
 0xbbf   :  { %2695 = vmatprep.subr.mxu1 %v3008_v0 }
 0xbc0   :  { %2696 = vmatpush3.msra.mxu1 %v3595_v41 }
 0xbc1   :  { %2697 = vmatprep.subr.mxu1 %v3008_v0 }
 0xbc2   :  { %2698 = vmatpush3.msra.mxu1 %v3599_v42 }
 0xbc3   :  { %2699 = vmatprep.subr.mxu1 %v3008_v0 }
 0xbc4   :  { %2700 = vmatpush3.msra.mxu1 %v3603_v1 }
 0xbc5   :  { %2701 = vmatprep.subr.mxu1 %v3008_v0 }
 0xbc6   :  { %2702 = vmatpush3.msra.mxu1 %v3607_v43 }
 0xbc7   :  { %2741 = vmatprep.subr.mxu1 %v3008_v0 }
 0xc59   :  { %v3754_v47 = vpop.f32.mrf.mxu1 }
 0xc5b   :  { %v3756_v3 = vpop.f32.mrf.mxu1 }
 0xc67   :  { %v1254_v6 = vpop.f32.mrf.mxu1 }
 0xc68   :  { %v1258_v8 = vadd.f32 %v1254_v6, %v1055_v4 }
 0xc69   :  { %v2635_v10 = vpop.f32.mrf.mxu1 }
 0xc6a   :  { %v1864_v12 = vmul.f32 -1.442695, %v1258_v8  ;;  %2926 = vtanh.f32 %v1258_v8 }
 0xc6c   :  { %2928 = vpow2.f32 %v1864_v12 }
 0xc77   :  { %v2927_v14 = vpop.eup %2926 }
 0xc78   :  { %1268 = vrot.lane.b32.xlu0 %v2927_v14, %s3012_s20 }
 0xc79   :  { %v2929_v16 = vpop.eup %2928 }
 0xc7a   :  { %v1262_v18 = vadd.f32 1.0, %v2929_v16 }
 0xc7c   :  { %2930 = vrcp.f32 %v1262_v18 }
 0xc89   :  { %v2931_v20 = vpop.eup %2930 }
 0xc8a   :  { %1266 = vrot.lane.b32.xlu1 %v2931_v20, %s3011_s17 }
 0xc8e   :  { %1270 = vrot.lane.b32.xlu1 %v2931_v20, %s3010_s16 }
 0xcea   :  { %v1269_v22 = vpop.permute.xlu0 %1268 }
 0xceb   :  { %v1273_v26 = vmul.f32 %v2931_v20, %v1269_v22  ;;  %v1070_v22 = vadd.f32 %v3695_v33, %v3752_v46 }
 0xcfc   :  { %v1267_v24 = vpop.permute.xlu1 %1266 }
 0xcfd   :  { %v1272_v28 = vmul.f32 %v1267_v24, %v3704_v15 }
 0xcff   :  { %v1274_v31 = vadd.f32 %v1273_v26, %v1272_v28 }
 0xd00   :  { %v1271_v63 = vpop.permute.xlu1 %1270 }
 0xd01   :  { %2932 = vtanh.f32 %v1274_v31 }
 0xd0e   :  { %v2933_v2 = vpop.eup %2932 }
 0xd0f   :  { %v1276_v48 = vmul.f32 %v2933_v2, %v1271_v63 }
 0xd11   :  { %1865 = vst [vmem:[%s3953_s4 + $0x8] sm:$0xff] %v1276_v48  ;;  %2669 = vmatmul.mubr.f32.vlgmr.msra.gmra.mxu0 %v1276_v48 }
 0xd12   :  { %2707 = vmatpush3.msra.mxu0 %v3548_v25  ;;  %2738 = vmatprep.mubr.msk.f32.mxu0 %vm3009_vm0, %v3008_v0 }
 0xd13   :  { %2708 = vmatprep.subr.mxu0 %v3008_v0 }
 0xd14   :  { %2709 = vmatpush3.msra.mxu0 %v3551_v37 }
 0xd15   :  { %2710 = vmatprep.subr.mxu0 %v3008_v0 }
 0xd16   :  { %2711 = vmatpush3.msra.mxu0 %v3555_v5 }
 0xd17   :  { %2712 = vmatprep.subr.mxu0 %v3008_v0 }
 0xd18   :  { %2713 = vmatpush3.msra.mxu0 %v3559_v27 }
 0xd19   :  { %2714 = vmatprep.subr.mxu0 %v3008_v0 }
 0xd1a   :  { %2715 = vmatpush3.msra.mxu0 %v3563_v29 }
 0xd1b   :  { %2716 = vmatprep.subr.mxu0 %v3008_v0 }
 0xd1c   :  { %2717 = vmatpush3.msra.mxu0 %v3567_v30 }
 0xd1d   :  { %2718 = vmatprep.subr.mxu0 %v3008_v0 }
 0xd1e   :  { %2719 = vmatpush3.msra.mxu0 %v3571_v32 }
 0xd1f   :  { %2720 = vmatprep.subr.mxu0 %v3008_v0 }
 0xd20   :  { %2721 = vmatpush3.msra.mxu0 %v3575_v34 }
 0xd21   :  { %2722 = vmatprep.subr.mxu0 %v3008_v0 }
 0xd22   :  { %2723 = vmatpush3.msra.mxu0 %v3579_v35 }
 0xd23   :  { %2724 = vmatprep.subr.mxu0 %v3008_v0 }
 0xd24   :  { %2725 = vmatpush3.msra.mxu0 %v3583_v38 }
 0xd25   :  { %2726 = vmatprep.subr.mxu0 %v3008_v0 }
 0xd26   :  { %2727 = vmatpush3.msra.mxu0 %v3587_v39 }
 0xd27   :  { %2728 = vmatprep.subr.mxu0 %v3008_v0 }
 0xd28   :  { %2729 = vmatpush3.msra.mxu0 %v3591_v40 }
 0xd29   :  { %2730 = vmatprep.subr.mxu0 %v3008_v0 }
 0xd2a   :  { %2731 = vmatpush3.msra.mxu0 %v3595_v41 }
 0xd2b   :  { %2732 = vmatprep.subr.mxu0 %v3008_v0 }
 0xd2c   :  { %2733 = vmatpush3.msra.mxu0 %v3599_v42 }
 0xd2d   :  { %2734 = vmatprep.subr.mxu0 %v3008_v0 }
 0xd2e   :  { %2735 = vmatpush3.msra.mxu0 %v3603_v1 }
 0xd2f   :  { %2736 = vmatprep.subr.mxu0 %v3008_v0 }
 0xd30   :  { %2737 = vmatpush3.msra.mxu0 %v3607_v43 }
 0xd31   :  { %2776 = vmatprep.subr.mxu0 %v3008_v0 }
 0xdd1   :  { %v1346_v50 = vpop.f32.mrf.mxu0 }
 0xdd2   :  { %v1350_v51 = vadd.f32 %v1346_v50, %v1060_v49 }
 0xdd3   :  { %v2670_v52 = vpop.f32.mrf.mxu0 }
 0xdd4   :  { %v1866_v60 = vmul.f32 -1.442695, %v1350_v51  ;;  %2934 = vtanh.f32 %v1350_v51 }
 0xdd6   :  { %2936 = vpow2.f32 %v1866_v60 }
 0xde1   :  { %v2935_v53 = vpop.eup %2934 }
 0xde2   :  { %1360 = vrot.lane.b32.xlu1 %v2935_v53, %s3012_s20 }
 0xde3   :  { %v2937_v55 = vpop.eup %2936 }
 0xde4   :  { %v1354_v56 = vadd.f32 1.0, %v2937_v55 }
 0xde6   :  { %2938 = vrcp.f32 %v1354_v56 }
 0xdf3   :  { %v2939_v57 = vpop.eup %2938 }
 0xdf4   :  { %1358 = vrot.lane.b32.xlu0 %v2939_v57, %s3011_s17 }
 0xdf8   :  { %1362 = vrot.lane.b32.xlu0 %v2939_v57, %s3010_s16 }
 0xe54   :  { %v1361_v58 = vpop.permute.xlu1 %1360 }
 0xe55   :  { %v1365_v62 = vmul.f32 %v2939_v57, %v1361_v58 }
 0xe66   :  { %v1359_v59 = vpop.permute.xlu0 %1358 }
 0xe67   :  { %v1364_v7 = vmul.f32 %v1359_v59, %v1274_v31 }
 0xe69   :  { %v1366_v9 = vadd.f32 %v1365_v62, %v1364_v7 }
 0xe6a   :  { %v1363_v13 = vpop.permute.xlu0 %1362 }
 0xe6b   :  { %2940 = vtanh.f32 %v1366_v9 }
 0xe78   :  { %v2941_v11 = vpop.eup %2940 }
 0xe79   :  { %v1368_v15 = vmul.f32 %v2941_v11, %v1363_v13 }
 0xe7b   :  { %1867 = vst [vmem:[%s3953_s4 + $0x10] sm:$0xff] %v1368_v15  ;;  %2704 = vmatmul.mubr.f32.vlgmr.msra.gmra.mxu1 %v1368_v15 }
 0xe7c   :  { %2742 = vmatpush3.msra.mxu1 %v3548_v25  ;;  %2773 = vmatprep.mubr.msk.f32.mxu1 %vm3009_vm0, %v3008_v0 }
 0xe7d   :  { %2743 = vmatprep.subr.mxu1 %v3008_v0 }
 0xe7e   :  { %2744 = vmatpush3.msra.mxu1 %v3551_v37 }
 0xe7f   :  { %2745 = vmatprep.subr.mxu1 %v3008_v0 }
 0xe80   :  { %2746 = vmatpush3.msra.mxu1 %v3555_v5 }
 0xe81   :  { %2747 = vmatprep.subr.mxu1 %v3008_v0 }
 0xe82   :  { %2748 = vmatpush3.msra.mxu1 %v3559_v27 }
 0xe83   :  { %2749 = vmatprep.subr.mxu1 %v3008_v0 }
 0xe84   :  { %2750 = vmatpush3.msra.mxu1 %v3563_v29 }
 0xe85   :  { %2751 = vmatprep.subr.mxu1 %v3008_v0 }
 0xe86   :  { %2752 = vmatpush3.msra.mxu1 %v3567_v30 }
 0xe87   :  { %2753 = vmatprep.subr.mxu1 %v3008_v0 }
 0xe88   :  { %2754 = vmatpush3.msra.mxu1 %v3571_v32 }
 0xe89   :  { %2755 = vmatprep.subr.mxu1 %v3008_v0 }
 0xe8a   :  { %2756 = vmatpush3.msra.mxu1 %v3575_v34 }
 0xe8b   :  { %2757 = vmatprep.subr.mxu1 %v3008_v0 }
 0xe8c   :  { %2758 = vmatpush3.msra.mxu1 %v3579_v35 }
 0xe8d   :  { %2759 = vmatprep.subr.mxu1 %v3008_v0 }
 0xe8e   :  { %2760 = vmatpush3.msra.mxu1 %v3583_v38 }
 0xe8f   :  { %2761 = vmatprep.subr.mxu1 %v3008_v0 }
 0xe90   :  { %2762 = vmatpush3.msra.mxu1 %v3587_v39 }
 0xe91   :  { %2763 = vmatprep.subr.mxu1 %v3008_v0 }
 0xe92   :  { %2764 = vmatpush3.msra.mxu1 %v3591_v40 }
 0xe93   :  { %2765 = vmatprep.subr.mxu1 %v3008_v0 }
 0xe94   :  { %2766 = vmatpush3.msra.mxu1 %v3595_v41 }
 0xe95   :  { %2767 = vmatprep.subr.mxu1 %v3008_v0 }
 0xe96   :  { %2768 = vmatpush3.msra.mxu1 %v3599_v42 }
 0xe97   :  { %2769 = vmatprep.subr.mxu1 %v3008_v0 }
 0xe98   :  { %2770 = vmatpush3.msra.mxu1 %v3603_v1 }
 0xe99   :  { %2771 = vmatprep.subr.mxu1 %v3008_v0 }
 0xe9a   :  { %2772 = vmatpush3.msra.mxu1 %v3607_v43 }
 0xe9b   :  { %2811 = vmatprep.subr.mxu1 %v3008_v0 }
 0xf3b   :  { %v1438_v17 = vpop.f32.mrf.mxu1 }
 0xf3c   :  { %v1442_v19 = vadd.f32 %v1438_v17, %v1065_v61 }
 0xf3d   :  { %v2705_v21 = vpop.f32.mrf.mxu1 }
 0xf3e   :  { %v1868_v36 = vmul.f32 -1.442695, %v1442_v19  ;;  %2942 = vtanh.f32 %v1442_v19 }
 0xf40   :  { %2944 = vpow2.f32 %v1868_v36 }
 0xf4b   :  { %v2943_v23 = vpop.eup %2942 }
 0xf4c   :  { %1452 = vrot.lane.b32.xlu0 %v2943_v23, %s3012_s20 }
 0xf4d   :  { %v2945_v44 = vpop.eup %2944 }
 0xf4e   :  { %v1446_v4 = vadd.f32 1.0, %v2945_v44  ;;  %v1085_v44 = vadd.f32 %v3754_v47, %v3695_v33 }
 0xf50   :  { %2946 = vrcp.f32 %v1446_v4 }
 0xf5d   :  { %v2947_v6 = vpop.eup %2946 }
 0xf5e   :  { %1450 = vrot.lane.b32.xlu1 %v2947_v6, %s3011_s17 }
 0xf62   :  { %1454 = vrot.lane.b32.xlu1 %v2947_v6, %s3010_s16 }
 0xfbe   :  { %v1453_v8 = vpop.permute.xlu0 %1452 }
 0xfbf   :  { %v1457_v54 = vmul.f32 %v2947_v6, %v1453_v8 }
 0xfd0   :  { %v1451_v10 = vpop.permute.xlu1 %1450 }
 0xfd1   :  { %v1456_v12 = vmul.f32 %v1451_v10, %v1366_v9 }
 0xfd3   :  { %v1458_v14 = vadd.f32 %v1457_v54, %v1456_v12 }
 0xfd4   :  { %v1455_v18 = vpop.permute.xlu1 %1454 }
 0xfd5   :  { %2948 = vtanh.f32 %v1458_v14 }
 0xfe2   :  { %v2949_v16 = vpop.eup %2948 }
 0xfe3   :  { %v1460_v20 = vmul.f32 %v2949_v16, %v1455_v18 }
 0xfe5   :  { %1869 = vst [vmem:[%s3953_s4 + $0x18] sm:$0xff] %v1460_v20  ;;  %2739 = vmatmul.mubr.f32.vlgmr.msra.gmra.mxu0 %v1460_v20 }
 0xfe6   :  { %2777 = vmatpush3.msra.mxu0 %v3548_v25  ;;  %2808 = vmatprep.mubr.msk.f32.mxu0 %vm3009_vm0, %v3008_v0 }
 0xfe7   :  { %2778 = vmatprep.subr.mxu0 %v3008_v0 }
 0xfe8   :  { %2779 = vmatpush3.msra.mxu0 %v3551_v37 }
 0xfe9   :  { %2780 = vmatprep.subr.mxu0 %v3008_v0 }
 0xfea   :  { %2781 = vmatpush3.msra.mxu0 %v3555_v5 }
 0xfeb   :  { %2782 = vmatprep.subr.mxu0 %v3008_v0 }
 0xfec   :  { %2783 = vmatpush3.msra.mxu0 %v3559_v27 }
 0xfed   :  { %2784 = vmatprep.subr.mxu0 %v3008_v0 }
 0xfee   :  { %2785 = vmatpush3.msra.mxu0 %v3563_v29 }
 0xfef   :  { %2786 = vmatprep.subr.mxu0 %v3008_v0 }
 0xff0   :  { %2787 = vmatpush3.msra.mxu0 %v3567_v30 }
 0xff1   :  { %2788 = vmatprep.subr.mxu0 %v3008_v0 }
 0xff2   :  { %2789 = vmatpush3.msra.mxu0 %v3571_v32 }
 0xff3   :  { %2790 = vmatprep.subr.mxu0 %v3008_v0 }
 0xff4   :  { %2791 = vmatpush3.msra.mxu0 %v3575_v34 }
 0xff5   :  { %2792 = vmatprep.subr.mxu0 %v3008_v0 }
 0xff6   :  { %2793 = vmatpush3.msra.mxu0 %v3579_v35 }
 0xff7   :  { %2794 = vmatprep.subr.mxu0 %v3008_v0 }
 0xff8   :  { %2795 = vmatpush3.msra.mxu0 %v3583_v38 }
 0xff9   :  { %2796 = vmatprep.subr.mxu0 %v3008_v0 }
 0xffa   :  { %2797 = vmatpush3.msra.mxu0 %v3587_v39 }
 0xffb   :  { %2798 = vmatprep.subr.mxu0 %v3008_v0 }
 0xffc   :  { %2799 = vmatpush3.msra.mxu0 %v3591_v40 }
 0xffd   :  { %2800 = vmatprep.subr.mxu0 %v3008_v0 }
 0xffe   :  { %2801 = vmatpush3.msra.mxu0 %v3595_v41 }
 0xfff   :  { %2802 = vmatprep.subr.mxu0 %v3008_v0 }
0x1000   :  { %2803 = vmatpush3.msra.mxu0 %v3599_v42 }
0x1001   :  { %2804 = vmatprep.subr.mxu0 %v3008_v0 }
0x1002   :  { %2805 = vmatpush3.msra.mxu0 %v3603_v1 }
0x1003   :  { %2806 = vmatprep.subr.mxu0 %v3008_v0 }
0x1004   :  { %2807 = vmatpush3.msra.mxu0 %v3607_v43 }
0x10a5   :  { %v1530_v24 = vpop.f32.mrf.mxu0 }
0x10a6   :  { %v1534_v26 = vadd.f32 %v1530_v24, %v1070_v22 }
0x10a7   :  { %v2740_v28 = vpop.f32.mrf.mxu0 }
0x10a8   :  { %v1870_v31 = vmul.f32 -1.442695, %v1534_v26  ;;  %2950 = vtanh.f32 %v1534_v26 }
0x10aa   :  { %2952 = vpow2.f32 %v1870_v31 }
0x10b5   :  { %v2951_v2 = vpop.eup %2950 }
0x10b6   :  { %1544 = vrot.lane.b32.xlu1 %v2951_v2, %s3012_s20 }
0x10b7   :  { %v2953_v63 = vpop.eup %2952 }
0x10b8   :  { %v1538_v48 = vadd.f32 1.0, %v2953_v63 }
0x10ba   :  { %2954 = vrcp.f32 %v1538_v48 }
0x10c7   :  { %v2955_v49 = vpop.eup %2954 }
0x10c8   :  { %1542 = vrot.lane.b32.xlu0 %v2955_v49, %s3011_s17 }
0x10cc   :  { %1546 = vrot.lane.b32.xlu0 %v2955_v49, %s3010_s16 }
0x1128   :  { %v1545_v50 = vpop.permute.xlu1 %1544 }
0x1129   :  { %v1549_v46 = vmul.f32 %v2955_v49, %v1545_v50 }
0x113a   :  { %v1543_v51 = vpop.permute.xlu0 %1542 }
0x113b   :  { %v1548_v52 = vmul.f32 %v1543_v51, %v1458_v14 }
0x113d   :  { %v1550_v60 = vadd.f32 %v1549_v46, %v1548_v52 }
0x113e   :  { %v1547_v55 = vpop.permute.xlu0 %1546 }
0x113f   :  { %2956 = vtanh.f32 %v1550_v60 }
0x114c   :  { %v2957_v53 = vpop.eup %2956 }
0x114d   :  { %v1552_v56 = vmul.f32 %v2957_v53, %v1547_v55 }
0x114f   :  { %1871 = vst [vmem:[%s3953_s4 + $0x20] sm:$0xff] %v1552_v56  ;;  %2774 = vmatmul.mubr.f32.vlgmr.msra.gmra.mxu1 %v1552_v56 }
0x1150   :  { %2812 = vmatpush3.msra.mxu1 %v3548_v25  ;;  %2843 = vmatprep.mubr.msk.f32.mxu1 %vm3009_vm0, %v3008_v0  ;;  %v1075_v25 = vadd.f32 %v3750_v45, %v3695_v33  ;;  %v1080_v45 = vadd.f32 %v3695_v33, %v3756_v3 }
0x1151   :  { %2813 = vmatprep.subr.mxu1 %v3008_v0 }
0x1152   :  { %2814 = vmatpush3.msra.mxu1 %v3551_v37 }
0x1153   :  { %2815 = vmatprep.subr.mxu1 %v3008_v0 }
0x1154   :  { %2816 = vmatpush3.msra.mxu1 %v3555_v5 }
0x1155   :  { %2817 = vmatprep.subr.mxu1 %v3008_v0 }
0x1156   :  { %2818 = vmatpush3.msra.mxu1 %v3559_v27 }
0x1157   :  { %2819 = vmatprep.subr.mxu1 %v3008_v0 }
0x1158   :  { %2820 = vmatpush3.msra.mxu1 %v3563_v29 }
0x1159   :  { %2821 = vmatprep.subr.mxu1 %v3008_v0 }
0x115a   :  { %2822 = vmatpush3.msra.mxu1 %v3567_v30 }
0x115b   :  { %2823 = vmatprep.subr.mxu1 %v3008_v0 }
0x115c   :  { %2824 = vmatpush3.msra.mxu1 %v3571_v32 }
0x115d   :  { %2825 = vmatprep.subr.mxu1 %v3008_v0 }
0x115e   :  { %2826 = vmatpush3.msra.mxu1 %v3575_v34 }
0x115f   :  { %2827 = vmatprep.subr.mxu1 %v3008_v0 }
0x1160   :  { %2828 = vmatpush3.msra.mxu1 %v3579_v35 }
0x1161   :  { %2829 = vmatprep.subr.mxu1 %v3008_v0 }
0x1162   :  { %2830 = vmatpush3.msra.mxu1 %v3583_v38 }
0x1163   :  { %2831 = vmatprep.subr.mxu1 %v3008_v0 }
0x1164   :  { %2832 = vmatpush3.msra.mxu1 %v3587_v39 }
0x1165   :  { %2833 = vmatprep.subr.mxu1 %v3008_v0 }
0x1166   :  { %2834 = vmatpush3.msra.mxu1 %v3591_v40 }
0x1167   :  { %2835 = vmatprep.subr.mxu1 %v3008_v0 }
0x1168   :  { %2836 = vmatpush3.msra.mxu1 %v3595_v41 }
0x1169   :  { %2837 = vmatprep.subr.mxu1 %v3008_v0 }
0x116a   :  { %2838 = vmatpush3.msra.mxu1 %v3599_v42 }
0x116b   :  { %2839 = vmatprep.subr.mxu1 %v3008_v0 }
0x116c   :  { %2840 = vmatpush3.msra.mxu1 %v3603_v1 }
0x116d   :  { %2841 = vmatprep.subr.mxu1 %v3008_v0 }
0x116e   :  { %2842 = vmatpush3.msra.mxu1 %v3607_v43 }
0x120f   :  { %v1622_v37 = vpop.f32.mrf.mxu1 }
0x1210   :  { %v1626_v5 = vadd.f32 %v1622_v37, %v1075_v25 }
0x1211   :  { %v2775_v27 = vpop.f32.mrf.mxu1 }
0x1212   :  { %v1872_v29 = vmul.f32 -1.442695, %v1626_v5  ;;  %2958 = vtanh.f32 %v1626_v5 }
0x1214   :  { %2960 = vpow2.f32 %v1872_v29 }
0x121f   :  { %v2959_v30 = vpop.eup %2958 }
0x1220   :  { %1636 = vrot.lane.b32.xlu0 %v2959_v30, %s3012_s20 }
0x1221   :  { %v2961_v32 = vpop.eup %2960 }
0x1222   :  { %v1630_v34 = vadd.f32 1.0, %v2961_v32 }
0x1224   :  { %2962 = vrcp.f32 %v1630_v34 }
0x1231   :  { %v2963_v35 = vpop.eup %2962 }
0x1232   :  { %1634 = vrot.lane.b32.xlu1 %v2963_v35, %s3011_s17 }
0x1236   :  { %1638 = vrot.lane.b32.xlu1 %v2963_v35, %s3010_s16 }
0x1292   :  { %v1637_v0 = vpop.permute.xlu0 %1636 }
0x1293   :  { %v1641_v39 = vmul.f32 %v2963_v35, %v1637_v0 }
0x12a4   :  { %v1635_v38 = vpop.permute.xlu1 %1634 }
0x12a5   :  { %v1640_v40 = vmul.f32 %v1635_v38, %v1550_v60 }
0x12a7   :  { %v1642_v41 = vadd.f32 %v1641_v39, %v1640_v40 }
0x12a8   :  { %v1639_v1 = vpop.permute.xlu1 %1638 }
0x12a9   :  { %2964 = vtanh.f32 %v1642_v41 }
0x12b6   :  { %v2965_v42 = vpop.eup %2964 }
0x12b7   :  { %v1644_v43 = vmul.f32 %v2965_v42, %v1639_v1 }
0x12b9   :  { %1873 = vst [vmem:[%s3953_s4 + $0x28] sm:$0xff] %v1644_v43  ;;  %2809 = vmatmul.mubr.f32.vlgmr.msra.gmra.mxu0 %v1644_v43 }
0x1379   :  { %v1714_v57 = vpop.f32.mrf.mxu0 }
0x137a   :  { %v1718_v58 = vadd.f32 %v1714_v57, %v1080_v45 }
0x137b   :  { %v2810_v59 = vpop.f32.mrf.mxu0 }
0x137c   :  { %v1874_v62 = vmul.f32 -1.442695, %v1718_v58  ;;  %2966 = vtanh.f32 %v1718_v58 }
0x137e   :  { %2968 = vpow2.f32 %v1874_v62 }
0x1389   :  { %v2967_v7 = vpop.eup %2966 }
0x138a   :  { %1728 = vrot.lane.b32.xlu1 %v2967_v7, %s3012_s20 }
0x138b   :  { %v2969_v9 = vpop.eup %2968 }
0x138c   :  { %v1722_v11 = vadd.f32 1.0, %v2969_v9 }
0x138e   :  { %2970 = vrcp.f32 %v1722_v11 }
0x139b   :  { %v2971_v13 = vpop.eup %2970 }
0x139c   :  { %1726 = vrot.lane.b32.xlu0 %v2971_v13, %s3011_s17 }
0x13a0   :  { %1730 = vrot.lane.b32.xlu0 %v2971_v13, %s3010_s16 }
0x13fc   :  { %v1729_v15 = vpop.permute.xlu1 %1728 }
0x13fd   :  { %v1733_v3 = vmul.f32 %v2971_v13, %v1729_v15 }
0x140e   :  { %v1727_v61 = vpop.permute.xlu0 %1726 }
0x140f   :  { %v1732_v17 = vmul.f32 %v1727_v61, %v1642_v41 }
0x1411   :  { %v1734_v19 = vadd.f32 %v1733_v3, %v1732_v17 }
0x1412   :  { %v1731_v36 = vpop.permute.xlu0 %1730 }
0x1413   :  { %2972 = vtanh.f32 %v1734_v19 }
0x1420   :  { %v2973_v21 = vpop.eup %2972 }
0x1421   :  { %v1736_v23 = vmul.f32 %v2973_v21, %v1731_v36 }
0x1423   :  { %1875 = vst [vmem:[%s3953_s4 + $0x30] sm:$0xff] %v1736_v23  ;;  %2844 = vmatmul.mubr.f32.vlgmr.msra.gmra.mxu1 %v1736_v23 }
0x14e3   :  { %v1806_v4 = vpop.f32.mrf.mxu1 }
0x14e4   :  { %v1810_v6 = vadd.f32 %v1806_v4, %v1085_v44 }
0x14e5   :  { %v2845_v8 = vpop.f32.mrf.mxu1 }
0x14e6   :  { %v1876_v10 = vmul.f32 -1.442695, %v1810_v6  ;;  %2974 = vtanh.f32 %v1810_v6 }
0x14e8   :  { %2976 = vpow2.f32 %v1876_v10 }
0x14f3   :  { %v2975_v54 = vpop.eup %2974 }
0x14f4   :  { %1820 = vrot.lane.b32.xlu0 %v2975_v54, %s3012_s20 }
0x14f5   :  { %v2977_v12 = vpop.eup %2976 }
0x14f6   :  { %v1814_v14 = vadd.f32 1.0, %v2977_v12 }
0x14f8   :  { %2978 = vrcp.f32 %v1814_v14 }
0x1505   :  { %v2979_v16 = vpop.eup %2978 }
0x1506   :  { %1818 = vrot.lane.b32.xlu1 %v2979_v16, %s3011_s17 }
0x150a   :  { %1822 = vrot.lane.b32.xlu1 %v2979_v16, %s3010_s16 }
0x1566   :  { %v1821_v18 = vpop.permute.xlu0 %1820 }
0x1567   :  { %v1825_v33 = vmul.f32 %v2979_v16, %v1821_v18 }
0x1578   :  { %v1819_v20 = vpop.permute.xlu1 %1818 }
0x1579   :  { %v1824_v47 = vmul.f32 %v1819_v20, %v1734_v19 }
0x157b   :  { %v1826_v22 = vadd.f32 %v1825_v33, %v1824_v47 }
0x157c   :  { %v1823_v26 = vpop.permute.xlu1 %1822 }
0x157d   :  { %2980 = vtanh.f32 %v1826_v22 }
0x158a   :  { %v2981_v24 = vpop.eup %2980 }
0x158b   :  { %v1828_v28 = vmul.f32 %v2981_v24, %v1823_v26 }
0x158d   :  { %1877 = vst [vmem:[%s3953_s4 + $0x38] sm:$0xff] %v1828_v28 }
0x158e   :  { %1835 = vsyncpa [#allocation5], 1 }

</bundles_post_ra>
